<compile_context>
chip_gen: v7x
topology: tpu7x:2x2x1
jax: 0.10.0
libtpu: 0.0.40
codegen_flags: <defaults>
</compile_context>

<pallas_src>
import functools

import jax
import jax.numpy as jnp
from jax import lax
from jax.experimental import pallas as pl
from jax.experimental.pallas import tpu as pltpu


def _round_up(x: int, m: int) -> int:
    return ((x + m - 1) // m) * m


def _vmem_capacity_bytes() -> int:
    """Per-core VMEM capacity; conservative (v7x-sized) fallback."""
    try:
        return int(pltpu.get_tpu_info().vmem_capacity_bytes)
    except Exception:
        return 64 * 1024 * 1024


def _single_buffered(block_shape, index_map):
    """BlockSpec for operands whose block index never changes (weights, bias):
    fetched once and, where supported, held in a single VMEM buffer instead of
    the default double buffer."""
    try:
        return pl.BlockSpec(block_shape, index_map, pipeline_mode=pl.Buffered(1))
    except Exception:  # older jax without BlockSpec.pipeline_mode
        return pl.BlockSpec(block_shape, index_map)


def _attention_kernel(x_ref, wq_ref, wk_ref, wv_ref, wo_ref, bo_ref,
                      o_ref, k_ref, v_ref, *, num_heads: int, n_true: int,
                      kv_chunk: int):
    # x_ref:  (1, N_pad, C) bf16 — full padded sequence of this batch element.
    # wq/wk/wv/wo: (C, C) bf16 (1/sqrt(Dh) folded into wq); bo: (1, C) f32.
    # o_ref:  (1, tq, C)
    # k_ref:  VMEM scratch (H, Dh, N_pad) bf16 (lane-dense keys)
    # v_ref:  VMEM scratch (H, N_pad, Dh) bf16
    qi = pl.program_id(1)
    n_pad = x_ref.shape[1]
    tq = o_ref.shape[1]
    c = wq_ref.shape[0]
    h = num_heads
    dh = c // h
    nkv = n_pad // kv_chunk

    # ---- K/V projection: once per batch element, into head-major scratch ----
    @pl.when(qi == 0)
    def _():
        xb = x_ref[0]                                              # (N_pad, C) bf16
        # K stored as (H, Dh, N_pad): 128-lane dense stores and natural MXU
        # weight layout for the score matmul.  K is stored before V is
        # computed so the two (N_pad, C) f32 temporaries never coexist.
        k = jnp.dot(xb, wk_ref[...], preferred_element_type=jnp.float32)
        k_ref[...] = jnp.transpose(k.astype(jnp.bfloat16)).reshape(h, dh, n_pad)
        v = jnp.dot(xb, wv_ref[...], preferred_element_type=jnp.float32)
        v_ref[...] = jnp.transpose(
            v.astype(jnp.bfloat16).reshape(n_pad, h, dh), (1, 0, 2))

    # ---- Q projection for this query tile (scale already folded into wq) ----
    q_start = pl.multiple_of(qi * tq, tq)
    xq = x_ref[0, pl.ds(q_start, tq), :]                           # (tq, C) bf16
    q = jnp.dot(xq, wq_ref[...], preferred_element_type=jnp.float32)
    q_h = jnp.transpose(q.astype(jnp.bfloat16).reshape(tq, h, dh), (1, 0, 2))

    def scores(k_blk, kv_off):
        s = jnp.einsum("hqd,hdk->hqk", q_h, k_blk,
                       preferred_element_type=jnp.float32)         # (H, tq, tk)
        if n_true < n_pad:  # mask zero-padded key columns (static branch)
            kidx = lax.broadcasted_iota(jnp.int32, s.shape, 2) + kv_off
            s = jnp.where(kidx < n_true, s, -1e30)
        return s

    if nkv == 1:
        # Whole score row resident; softmax normalization deferred to ctx.
        s = scores(k_ref[...], 0)
        m = jnp.max(s, axis=-1, keepdims=True)
        p = jnp.exp(s - m)                                          # f32 exp (portable)
        l = jnp.sum(p, axis=-1, keepdims=True)
        acc = jnp.einsum("hqk,hkd->hqd", p.astype(jnp.bfloat16), v_ref[...],
                         preferred_element_type=jnp.float32)
    else:
        # Online softmax over KV chunks: bounds the live score buffer to
        # (H, tq, kv_chunk) instead of (H, tq, N_pad).
        def body(i, carry):
            m_prev, l_prev, acc_prev = carry
            off = pl.multiple_of(i * kv_chunk, kv_chunk)
            k_blk = k_ref[:, :, pl.ds(off, kv_chunk)]               # (H, Dh, tk)
            v_blk = v_ref[:, pl.ds(off, kv_chunk), :]               # (H, tk, Dh)
            s = scores(k_blk, off)
            m_new = jnp.maximum(m_prev, jnp.max(s, axis=-1, keepdims=True))
            alpha = jnp.exp(m_prev - m_new)
            p = jnp.exp(s - m_new)
            l_new = alpha * l_prev + jnp.sum(p, axis=-1, keepdims=True)
            acc_new = alpha * acc_prev + jnp.einsum(
                "hqk,hkd->hqd", p.astype(jnp.bfloat16), v_blk,
                preferred_element_type=jnp.float32)
            return m_new, l_new, acc_new

        m0 = jnp.full((h, tq, 1), -1e30, dtype=jnp.float32)
        l0 = jnp.zeros((h, tq, 1), dtype=jnp.float32)
        acc0 = jnp.zeros((h, tq, dh), dtype=jnp.float32)
        _, l, acc = lax.fori_loop(0, nkv, body, (m0, l0, acc0))

    # Deferred normalization, applied in f32 on the (H, tq, Dh) context
    # (N/Dh fewer multiplies than normalizing the probability tensor);
    # EUP reciprocal is ~free.
    ctx = acc * pl.reciprocal(l, approx=True)
    ctx = jnp.transpose(ctx.astype(jnp.bfloat16), (1, 0, 2)).reshape(tq, c)

    # Output projection + bias.
    y = jnp.dot(ctx, wo_ref[...], preferred_element_type=jnp.float32)
    y = y + bo_ref[...]
    o_ref[0] = y.astype(o_ref.dtype)


def prepare_attention_params(w_qkv, w_proj, b_proj, *, num_heads: int,
                             param_dtype=jnp.bfloat16):
    """One-off parameter prep: split qkv, fold 1/sqrt(Dh) into W_q, cast bf16."""
    C = w_qkv.shape[0]
    assert w_qkv.shape == (C, 3 * C)
    head_dim = C // num_heads
    scale = float(head_dim) ** -0.5
    w_q = (w_qkv[:, 0 * C:1 * C] * scale).astype(param_dtype)
    w_k = w_qkv[:, 1 * C:2 * C].astype(param_dtype)
    w_v = w_qkv[:, 2 * C:3 * C].astype(param_dtype)
    w_o = w_proj.astype(param_dtype)
    b_o = b_proj.reshape(1, C).astype(jnp.float32)
    return w_q, w_k, w_v, w_o, b_o


def attention_forward(x, params, *, num_heads: int, q_block=None, kv_chunk=None):
    """Pallas implementation of DINOv2 Attention.forward (inference, no dropout)."""
    w_q, w_k, w_v, w_o, b_o = params
    B, N, C = x.shape
    assert C % num_heads == 0
    H = num_heads
    Dh = C // H
    out_dtype = x.dtype

    cap = _vmem_capacity_bytes()
    if q_block is None:
        # Larger q tiles amortize MXU fill/drain and per-step overhead where
        # VMEM allows (v5e/v6e: 128 MiB/TC); keep 128 on v7x (64 MiB/TC).
        q_block = 256 if cap >= 96 * 1024 * 1024 else 128

    # Robust q tiling: pad N so the q tile always divides it; padded key
    # columns are masked in-kernel, padded query rows are sliced off below.
    tq = q_block if N >= q_block else _round_up(N, 8)
    n_pad = _round_up(N, tq)
    n_q = n_pad // tq

    # KV chunking (online softmax) when the full score row would be large.
    if kv_chunk is None:
        kv_chunk = tq if H * tq * n_pad * 4 > 4 * 1024 * 1024 else n_pad
    kv_chunk = min(kv_chunk, n_pad)
    assert n_pad % kv_chunk == 0, "kv_chunk must divide the padded sequence"

    # Cast activations to bf16 once at the boundary (halves x DMA + buffers;
    # the kernel computed in bf16 anyway) and zero-pad the sequence dim.
    xp = x.astype(jnp.bfloat16)
    if n_pad != N:
        xp = jnp.pad(xp, ((0, 0), (0, n_pad - N), (0, 0)))

    kernel = functools.partial(_attention_kernel, num_heads=num_heads,
                               n_true=N, kv_chunk=kv_chunk)

    # VMEM budget estimate (generous) with headroom, capped per generation so
    # the compiler keeps internal scratch (v7x: <=~54 MiB, v5e/v6e: <=~108 MiB).
    est = (2 * n_pad * C * 2                              # x (bf16, 2 buffers)
           + 2 * tq * C * jnp.dtype(out_dtype).itemsize   # output tile
           + 4 * C * C * 2 + C * 4                        # single-buffered weights + bias
           + 2 * H * n_pad * Dh * 2                       # K/V scratch (bf16)
           + n_pad * C * 4                                # K/V projection transient
           + 3 * H * tq * kv_chunk * 4                    # score / exp / bf16 copy
           + 2 * H * tq * Dh * 4 + 3 * tq * C * 4)        # acc / ctx / q temps
    vmem_limit = int(min(int(0.85 * cap), max(32 * 1024 * 1024, 2 * est)))

    out = pl.pallas_call(
        kernel,
        out_shape=jax.ShapeDtypeStruct((B, n_pad, C), out_dtype),
        grid_spec=pltpu.PrefetchScalarGridSpec(
            num_scalar_prefetch=0,
            grid=(B, n_q),
            in_specs=[
                # Full (padded) sequence: block index constant across q tiles,
                # so it is DMA'd once per batch element; the query tile is
                # sliced out of it in-kernel (no duplicate x input).
                pl.BlockSpec((1, n_pad, C), lambda b, qi: (b, 0, 0)),
                # Weights / bias: constant block index -> fetched once and
                # single-buffered.
                _single_buffered((C, C), lambda b, qi: (0, 0)),
                _single_buffered((C, C), lambda b, qi: (0, 0)),
                _single_buffered((C, C), lambda b, qi: (0, 0)),
                _single_buffered((C, C), lambda b, qi: (0, 0)),
                _single_buffered((1, C), lambda b, qi: (0, 0)),
            ],
            out_specs=pl.BlockSpec((1, tq, C), lambda b, qi: (b, qi, 0)),
            scratch_shapes=[
                pltpu.VMEM((H, Dh, n_pad), jnp.bfloat16),  # K (lane-dense keys)
                pltpu.VMEM((H, n_pad, Dh), jnp.bfloat16),  # V
            ],
        ),
        compiler_params=pltpu.CompilerParams(
            # Batch axis parallel (megacore); q-tile axis must stay arbitrary
            # because K/V scratch is filled at qi == 0 and reused.
            dimension_semantics=("parallel", "arbitrary"),
            vmem_limit_bytes=vmem_limit,
        ),
    )(xp, w_q, w_k, w_v, w_o, b_o)

    if n_pad != N:
        out = out[:, :N, :]
    return out


def attention_reference(x, w_qkv, w_proj, b_proj, *, num_heads: int):
    """Pure-JAX f32 reference mirroring the PyTorch forward exactly."""
    B, N, C = x.shape
    head_dim = C // num_heads
    scale = float(head_dim) ** -0.5
    qkv = jnp.einsum("bnc,cd->bnd", x, w_qkv)
    qkv = qkv.reshape(B, N, 3, num_heads, head_dim)
    qkv = jnp.transpose(qkv, (2, 0, 3, 1, 4))
    q, k, v = qkv[0] * scale, qkv[1], qkv[2]
    attn = jnp.einsum("bhqd,bhkd->bhqk", q, k)
    attn = jax.nn.softmax(attn, axis=-1)
    ctx = jnp.einsum("bhqk,bhkd->bhqd", attn, v)
    ctx = jnp.transpose(ctx, (0, 2, 1, 3)).reshape(B, N, C)
    return jnp.einsum("bnc,cd->bnd", ctx, w_proj) + b_proj.reshape(1, 1, C)


if __name__ == "__main__":
    def run_case(key, B, N, C, H, **kw):
        kx, kqkv, kproj, kb = jax.random.split(key, 4)
        x = jax.random.normal(kx, (B, N, C), dtype=jnp.float32)
        w_qkv = jax.random.normal(kqkv, (C, 3 * C), dtype=jnp.float32) * 0.05
        w_proj = jax.random.normal(kproj, (C, C), dtype=jnp.float32) * 0.05
        b_proj = jax.random.normal(kb, (C,), dtype=jnp.float32) * 0.01
        params = prepare_attention_params(w_qkv, w_proj, b_proj, num_heads=H)
        out = jax.block_until_ready(attention_forward(x, params, num_heads=H, **kw))
        ref = attention_reference(x, w_qkv, w_proj, b_proj, num_heads=H)
        assert out.shape == (B, N, C)
        max_err = float(jnp.max(jnp.abs(out - ref)))
        # bf16 matmul inputs + approx reciprocal -> relaxed tolerance vs f32 ref.
        assert jnp.allclose(out, ref, atol=2e-2, rtol=2e-2), f"mismatch: {max_err}"

    key = jax.random.PRNGKey(0)
    k1, k2 = jax.random.split(key)
    # Canonical small case: single q tile, single kv chunk, no padding.
    run_case(k1, B=2, N=16, C=64, H=8)
    # Padded / masked / multi-q-tile / online-softmax (chunked KV) path.
    run_case(k2, B=1, N=200, C=128, H=4, q_block=128, kv_chunk=128)

    print("KERNEL_OK")
</pallas_src>

<mosaic_0001>
module attributes {stable_mosaic.version = 11 : i64} {
  func.func @_attention_kernel(%arg0: i32, %arg1: i32, %arg2: memref<1x16x64xbf16, #tpu.memory_space<vmem>>, %arg3: memref<64x64xbf16, #tpu.memory_space<vmem>>, %arg4: memref<64x64xbf16, #tpu.memory_space<vmem>>, %arg5: memref<64x64xbf16, #tpu.memory_space<vmem>>, %arg6: memref<64x64xbf16, #tpu.memory_space<vmem>>, %arg7: memref<1x64xf32, #tpu.memory_space<vmem>>, %arg8: memref<1x16x64xf32, #tpu.memory_space<vmem>>, %arg9: memref<8x8x16xbf16, #tpu.memory_space<vmem>>, %arg10: memref<8x16x8xbf16, #tpu.memory_space<vmem>>) attributes {dimension_semantics = [#tpu.dimension_semantics<parallel>, #tpu.dimension_semantics<arbitrary>], iteration_bounds = array<i64: 2, 1>, scalar_prefetch = 0 : i64, scratch_operands = 2 : i64, tpu.core_type = #tpu.core_type<tc>, window_params = [{transform_indices = @transform_0, window_bounds = array<i64: 1, 16, 64>}, {pipeline_mode = #tpu.pipeline_mode<synchronous>, transform_indices = @transform_1, window_bounds = array<i64: 64, 64>}, {pipeline_mode = #tpu.pipeline_mode<synchronous>, transform_indices = @transform_2, window_bounds = array<i64: 64, 64>}, {pipeline_mode = #tpu.pipeline_mode<synchronous>, transform_indices = @transform_3, window_bounds = array<i64: 64, 64>}, {pipeline_mode = #tpu.pipeline_mode<synchronous>, transform_indices = @transform_4, window_bounds = array<i64: 64, 64>}, {pipeline_mode = #tpu.pipeline_mode<synchronous>, transform_indices = @transform_5, window_bounds = array<i64: 1, 64>}, {transform_indices = @transform_6, window_bounds = array<i64: 1, 16, 64>}]} {
    %c0_i32 = arith.constant 0 : i32
    %0 = arith.cmpi eq, %arg1, %c0_i32 : i32
    %1 = arith.extui %0 : i1 to i32
    %c0_i32_0 = arith.constant 0 : i32
    %2 = arith.cmpi ne, %1, %c0_i32_0 : i32
    scf.if %2 {
      %c0_22 = arith.constant 0 : index
      %c0_23 = arith.constant 0 : index
      %c0_24 = arith.constant 0 : index
      %39 = vector.load %arg2[%c0_22, %c0_23, %c0_24] : memref<1x16x64xbf16, #tpu.memory_space<vmem>>, vector<1x16x64xbf16>
      %40 = vector.shape_cast %39 : vector<1x16x64xbf16> to vector<16x64xbf16>
      %c0_25 = arith.constant 0 : index
      %c0_26 = arith.constant 0 : index
      %41 = vector.load %arg4[%c0_25, %c0_26] : memref<64x64xbf16, #tpu.memory_space<vmem>>, vector<64x64xbf16>
      %cst_27 = arith.constant dense<0.000000e+00> : vector<16x64xf32>
      %42 = tpu.matmul %40, %41, %cst_27 {dimension_numbers = #tpu.dot_dimension_numbers<[1], [0], [0], [1], [0, 0, 1, 1], [], []>} : vector<16x64xbf16>, vector<64x64xbf16>, vector<16x64xf32> -> vector<16x64xf32>
      %43 = arith.truncf %42 : vector<16x64xf32> to vector<16x64xbf16>
      %44 = tpu.transpose %43, [1, 0] : vector<16x64xbf16> -> vector<64x16xbf16>
      %45 = vector.shape_cast %44 : vector<64x16xbf16> to vector<8x8x16xbf16>
      %c0_28 = arith.constant 0 : index
      %c0_29 = arith.constant 0 : index
      %c0_30 = arith.constant 0 : index
      %46 = vector.load %arg9[%c0_28, %c0_29, %c0_30] : memref<8x8x16xbf16, #tpu.memory_space<vmem>>, vector<8x8x16xbf16>
      tpu.vector_store %arg9[%c0_28, %c0_29, %c0_30], %45 {strides = array<i32>} : memref<8x8x16xbf16, #tpu.memory_space<vmem>>, vector<8x8x16xbf16>,
      %c0_31 = arith.constant 0 : index
      %c0_32 = arith.constant 0 : index
      %47 = vector.load %arg5[%c0_31, %c0_32] : memref<64x64xbf16, #tpu.memory_space<vmem>>, vector<64x64xbf16>
      %cst_33 = arith.constant dense<0.000000e+00> : vector<16x64xf32>
      %48 = tpu.matmul %40, %47, %cst_33 {dimension_numbers = #tpu.dot_dimension_numbers<[1], [0], [0], [1], [0, 0, 1, 1], [], []>} : vector<16x64xbf16>, vector<64x64xbf16>, vector<16x64xf32> -> vector<16x64xf32>
      %49 = arith.truncf %48 : vector<16x64xf32> to vector<16x64xbf16>
      %50 = vector.shape_cast %49 : vector<16x64xbf16> to vector<16x8x8xbf16>
      %51 = tpu.transpose %50, [1, 0, 2] : vector<16x8x8xbf16> -> vector<8x16x8xbf16>
      %c0_34 = arith.constant 0 : index
      %c0_35 = arith.constant 0 : index
      %c0_36 = arith.constant 0 : index
      %52 = vector.load %arg10[%c0_34, %c0_35, %c0_36] : memref<8x16x8xbf16, #tpu.memory_space<vmem>>, vector<8x16x8xbf16>
      tpu.vector_store %arg10[%c0_34, %c0_35, %c0_36], %51 {strides = array<i32>} : memref<8x16x8xbf16, #tpu.memory_space<vmem>>, vector<8x16x8xbf16>,
    } else {
    }
    %c16_i32 = arith.constant 16 : i32
    %3 = arith.muli %arg1, %c16_i32 : i32
    %4 = tpu.assume_multiple %3, 16 : i32
    %c0 = arith.constant 0 : index
    %5 = arith.index_cast %4 : i32 to index
    %c0_1 = arith.constant 0 : index
    %6 = vector.load %arg2[%c0, %5, %c0_1] : memref<1x16x64xbf16, #tpu.memory_space<vmem>>, vector<1x16x64xbf16>
    %7 = vector.shape_cast %6 : vector<1x16x64xbf16> to vector<16x64xbf16>
    %c0_2 = arith.constant 0 : index
    %c0_3 = arith.constant 0 : index
    %8 = vector.load %arg3[%c0_2, %c0_3] : memref<64x64xbf16, #tpu.memory_space<vmem>>, vector<64x64xbf16>
    %cst = arith.constant dense<0.000000e+00> : vector<16x64xf32>
    %9 = tpu.matmul %7, %8, %cst {dimension_numbers = #tpu.dot_dimension_numbers<[1], [0], [0], [1], [0, 0, 1, 1], [], []>} : vector<16x64xbf16>, vector<64x64xbf16>, vector<16x64xf32> -> vector<16x64xf32>
    %10 = arith.truncf %9 : vector<16x64xf32> to vector<16x64xbf16>
    %11 = vector.shape_cast %10 : vector<16x64xbf16> to vector<16x8x8xbf16>
    %12 = tpu.transpose %11, [1, 0, 2] : vector<16x8x8xbf16> -> vector<8x16x8xbf16>
    %c0_4 = arith.constant 0 : index
    %c0_5 = arith.constant 0 : index
    %c0_6 = arith.constant 0 : index
    %13 = vector.load %arg9[%c0_4, %c0_5, %c0_6] : memref<8x8x16xbf16, #tpu.memory_space<vmem>>, vector<8x8x16xbf16>
    "tpu.trace_start"() <{level = 10 : i32, message = "hqd,hdk->hqk"}> : () -> ()
    %cst_7 = arith.constant dense<0.000000e+00> : vector<8x16x16xf32>
    %14 = tpu.matmul %12, %13, %cst_7 {dimension_numbers = #tpu.dot_dimension_numbers<[2], [1], [1], [2], [0, 0, 0, 1, 1, 2], [0], [0]>} : vector<8x16x8xbf16>, vector<8x8x16xbf16>, vector<8x16x16xf32> -> vector<8x16x16xf32>
    "tpu.trace_stop"() : () -> ()
    %cst_8 = arith.constant dense<0xFF800000> : vector<8x16xf32>
    %15 = vector.multi_reduction <maximumf>, %14, %cst_8 [2] : vector<8x16x16xf32> to vector<8x16xf32>
    %16 = vector.shape_cast %15 : vector<8x16xf32> to vector<8x16x1xf32>
    %17 = vector.broadcast %16 : vector<8x16x1xf32> to vector<8x16x16xf32>
    %18 = arith.subf %14, %17 : vector<8x16x16xf32>
    %19 = math.exp %18 : vector<8x16x16xf32>
    %cst_9 = arith.constant dense<0.000000e+00> : vector<8x16xf32>
    %20 = vector.multi_reduction <add>, %19, %cst_9 [2] : vector<8x16x16xf32> to vector<8x16xf32>
    %21 = vector.shape_cast %20 : vector<8x16xf32> to vector<8x16x1xf32>
    %22 = arith.truncf %19 : vector<8x16x16xf32> to vector<8x16x16xbf16>
    %c0_10 = arith.constant 0 : index
    %c0_11 = arith.constant 0 : index
    %c0_12 = arith.constant 0 : index
    %23 = vector.load %arg10[%c0_10, %c0_11, %c0_12] : memref<8x16x8xbf16, #tpu.memory_space<vmem>>, vector<8x16x8xbf16>
    "tpu.trace_start"() <{level = 10 : i32, message = "hqk,hkd->hqd"}> : () -> ()
    %cst_13 = arith.constant dense<0.000000e+00> : vector<8x16x8xf32>
    %24 = tpu.matmul %22, %23, %cst_13 {dimension_numbers = #tpu.dot_dimension_numbers<[2], [1], [1], [2], [0, 0, 0, 1, 1, 2], [0], [0]>} : vector<8x16x16xbf16>, vector<8x16x8xbf16>, vector<8x16x8xf32> -> vector<8x16x8xf32>
    "tpu.trace_stop"() : () -> ()
    %25 = tpu.reciprocal %21 {approx = true} : vector<8x16x1xf32> -> vector<8x16x1xf32>
    %26 = vector.broadcast %25 : vector<8x16x1xf32> to vector<8x16x8xf32>
    %27 = arith.mulf %24, %26 : vector<8x16x8xf32>
    %28 = arith.truncf %27 : vector<8x16x8xf32> to vector<8x16x8xbf16>
    %29 = tpu.transpose %28, [1, 0, 2] : vector<8x16x8xbf16> -> vector<16x8x8xbf16>
    %30 = vector.shape_cast %29 : vector<16x8x8xbf16> to vector<16x64xbf16>
    %c0_14 = arith.constant 0 : index
    %c0_15 = arith.constant 0 : index
    %31 = vector.load %arg6[%c0_14, %c0_15] : memref<64x64xbf16, #tpu.memory_space<vmem>>, vector<64x64xbf16>
    %cst_16 = arith.constant dense<0.000000e+00> : vector<16x64xf32>
    %32 = tpu.matmul %30, %31, %cst_16 {dimension_numbers = #tpu.dot_dimension_numbers<[1], [0], [0], [1], [0, 0, 1, 1], [], []>} : vector<16x64xbf16>, vector<64x64xbf16>, vector<16x64xf32> -> vector<16x64xf32>
    %c0_17 = arith.constant 0 : index
    %c0_18 = arith.constant 0 : index
    %33 = vector.load %arg7[%c0_17, %c0_18] : memref<1x64xf32, #tpu.memory_space<vmem>>, vector<1x64xf32>
    %34 = vector.broadcast %33 : vector<1x64xf32> to vector<16x64xf32>
    %35 = arith.addf %32, %34 : vector<16x64xf32>
    %c0_19 = arith.constant 0 : index
    %c0_20 = arith.constant 0 : index
    %c0_21 = arith.constant 0 : index
    %36 = vector.load %arg8[%c0_19, %c0_20, %c0_21] : memref<1x16x64xf32, #tpu.memory_space<vmem>>, vector<1x16x64xf32>
    %37 = vector.shape_cast %36 : vector<1x16x64xf32> to vector<16x64xf32>
    %38 = vector.shape_cast %35 : vector<16x64xf32> to vector<1x16x64xf32>
    tpu.vector_store %arg8[%c0_19, %c0_20, %c0_21], %38 {strides = array<i32>} : memref<1x16x64xf32, #tpu.memory_space<vmem>>, vector<1x16x64xf32>,
    return
  }
  func.func @transform_0(%arg0: i32, %arg1: i32) -> (i32, i32, i32) {
    %c0_i32 = arith.constant 0 : i32
    %c0_i32_0 = arith.constant 0 : i32
    %c0_i32_1 = arith.constant 0 : i32
    return %arg0, %c0_i32, %c0_i32_0 : i32, i32, i32
  }
  func.func @transform_1(%arg0: i32, %arg1: i32) -> (i32, i32) {
    %c0_i32 = arith.constant 0 : i32
    %c0_i32_0 = arith.constant 0 : i32
    %c0_i32_1 = arith.constant 0 : i32
    return %c0_i32, %c0_i32_0 : i32, i32
  }
  func.func @transform_2(%arg0: i32, %arg1: i32) -> (i32, i32) {
    %c0_i32 = arith.constant 0 : i32
    %c0_i32_0 = arith.constant 0 : i32
    %c0_i32_1 = arith.constant 0 : i32
    return %c0_i32, %c0_i32_0 : i32, i32
  }
  func.func @transform_3(%arg0: i32, %arg1: i32) -> (i32, i32) {
    %c0_i32 = arith.constant 0 : i32
    %c0_i32_0 = arith.constant 0 : i32
    %c0_i32_1 = arith.constant 0 : i32
    return %c0_i32, %c0_i32_0 : i32, i32
  }
  func.func @transform_4(%arg0: i32, %arg1: i32) -> (i32, i32) {
    %c0_i32 = arith.constant 0 : i32
    %c0_i32_0 = arith.constant 0 : i32
    %c0_i32_1 = arith.constant 0 : i32
    return %c0_i32, %c0_i32_0 : i32, i32
  }
  func.func @transform_5(%arg0: i32, %arg1: i32) -> (i32, i32) {
    %c0_i32 = arith.constant 0 : i32
    %c0_i32_0 = arith.constant 0 : i32
    %c0_i32_1 = arith.constant 0 : i32
    return %c0_i32, %c0_i32_0 : i32, i32
  }
  func.func @transform_6(%arg0: i32, %arg1: i32) -> (i32, i32, i32) {
    %c0_i32 = arith.constant 0 : i32
    %c0_i32_0 = arith.constant 0 : i32
    return %arg0, %arg1, %c0_i32 : i32, i32, i32
  }
}

</mosaic_0001>

<bundles_post_ra>
// kernel: tpu_custom_call.1
= control target key start
LH: loop header
LB: loop body
LE: loop exit
PB: predicated region body
PF: predicated region fallthrough
CT: control target
= control target key end

     0   :  { %s4335_s0 = inlined_call_operand.hbm [shape: bf16[2,16,64], index: 0, kind: input, shape index: {}]   ;;  %s4336_s1 = inlined_call_operand.hbm [shape: bf16[64,64], index: 1, kind: input, shape index: {}]   ;;  %s4337_s2 = inlined_call_operand.hbm [shape: bf16[64,64], index: 2, kind: input, shape index: {}]   ;;  %s4338_s3 = inlined_call_operand.hbm [shape: bf16[64,64], index: 3, kind: input, shape index: {}]   ;;  %s4339_s4 = inlined_call_operand.hbm [shape: bf16[64,64], index: 4, kind: input, shape index: {}]   ;;  %s4340_s5 = inlined_call_operand.vmem [shape: f32[1,64], index: 5, kind: input, shape index: {}]   ;;  %s4341_s6 = inlined_call_operand.hbm [shape: f32[2,16,64], index: 6, kind: output, shape index: {}]  }
   0x1   :  { %4349 = sst [smem:[#allocation20_spill]] %s4341_s6 }
   0x2   :  { %11 = vsyncpa [#allocation5], 0 }
   0x3   :  { %13 = vsyncpa [#allocation5 + $0x1], 0 }
   0x4   :  { %14 = vsyncpa [#allocation8], 0 }
   0x5   :  { %15 = vsyncpa [#allocation11], 0 }
   0x6   :  { %16 = vsyncpa [#allocation6], 0 }
   0x7   :  { %18 = vsyncpa [#allocation6 + $0x1], 0  ;;  %s3661_s21 = smov 0   ;;  %s3663_s22 = smov 0  }
   0x8   :  { %s3665_s23 = smov 0   ;;  %s3667_s24 = smov 0  }
   0x9   :  { %s3669_s25 = smov 0   ;;  %s3671_s26 = smov 0  }
   0xa LB: > { %4350 = sst [smem:[#allocation18_spill]] %s3577_s21  ;;  %s2878_s27 = sadd.s32 4294967295, %s3597_s26   ;;  %s3597_s26 = sphi %s3671_s26, %s24_s26   ;;  %s3593_s25 = sphi %s3669_s25, %s4374_s25   ;;  %s3589_s24 = sphi %s3667_s24, %s4373_s24   ;;  %s3585_s23 = sphi %s3665_s23, %s4372_s23   ;;  %s3581_s22 = sphi %s3663_s22, %s4371_s22   ;;  %s3577_s21 = sphi %s3661_s21, %s4370_s21  }
   0xb   : > { %s2879_s28 = sadd.s32 4294967294, %s3597_s26   ;;  %p56_p0 = scmp.ne.s32.totalorder %s3581_s22, %s3577_s21 }
   0xc   : > { %p3695_p1 = scmp.eq.s32.totalorder %s2878_s27, 0  ;;  %p3699_p2 = scmp.eq.s32.totalorder %s2878_s27, 1 }
   0xd   : > { %p193_p3 = scmp.eq.s32.totalorder %s2879_s28, 1  ;;  %p2880_p5 = scmp.ge.s32.totalorder %s3597_s26, 1 }
   0xe   : > { %s4351_s29 = scalar_select %p3695_p1, 1, 0 }
   0xf   : > { %s4352_s30 = scalar_select %p3699_p2, 1, 0 }
  0x10   : > { %p3705_p4 = por %p3695_p1, %p56_p0  ;;  %p3710_p6 = por %p193_p3, %p56_p0 }
  0x11   : > { %p200_p7 = scmp.lt.s32.totalorder %s3597_s26, 3  ;;  %s3599_s10 = smov [#allocation7]  }
  0x12   : > { %s4353_s7 = scalar_select %p3705_p4, 1, 0 }
  0x13   : > { %s4354_s8 = scalar_select %p3710_p6, 1, 0 }
  0x14   : > { %p3715_p8 = pnand %p2880_p5, %p200_p7  ;;  %s212_s11 = sshll.u32 %s3599_s10, 4  ;;  %s3719_s11 = int_to_ptr.vmem [resolvable:$true] %s212_s11 }
  0x15   : > { %4355 = sst [smem:[#allocation19_spill]] %s4354_s8  ;;  %s3600_s13 = smov [#allocation10]  }
  0x16   : > { %s4356_s9 = scalar_select %p3715_p8, 1, 0 }
  0x17   : > { %p3178_p9 = pneg %p3715_p8  ;;  %s238_s14 = sshll.u32 %s3600_s13, 4  ;;  %s3730_s14 = int_to_ptr.vmem [resolvable:$true] %s238_s14 }
  0x18   : > { %s3601_s15 = smov [#allocation9]   ;;  %s3365_s19 = scalar_lea.hbm %s4336_s1, 512 }
  0x19   : > { %p3726_p11 = pnand %p3178_p9, %p3695_p1  ;;  %s3732_s16 = sshll.u32 %s3601_s15, 4  ;;  %s226_s16 = int_to_ptr.vmem [resolvable:$true] %s3732_s16 }
  0x1a   : > { %p3366_p12 = scmp.ne.s32.totalorder %s4336_s1, %s3365_s19  ;;  %p3372_p5 = scmp.lt.u32.totalorder %s3365_s19, %s4336_s1 }
  0x1b   : > { %p3742_p13 = pneg %p3726_p11 }
  0x1d   : > { %p3368_p0 = pnand %p3742_p13, %p3366_p12 }
  0x1f   : > { %p3369_p3 = pneg %p3368_p0 }
  0x21   : > { %p3374_p7 = pnand %p3372_p5, %p3369_p3 }
  0x23   : > { %3377 = shalt.err (!%p3374_p7)
}
  0x24   : > { %s3378_s15 = scalar_lea.vmem %s3719_s11, 512  ;;  %p3386_p1 = scmp.lt.s32.totalorder %s3719_s11, %s3719_s11 }
  0x25   : > { %p3379_p9 = scmp.ne.s32.totalorder %s3719_s11, %s3378_s15  ;;  %p3387_p4 = scmp.lt.s32.totalorder %s3378_s15, %s3378_s15 }
  0x27   : > { %p3381_p10 = pnand %p3379_p9, %p3742_p13  ;;  %p3388_p12 = por %p3387_p4, %p3386_p1 }
  0x29   : > { %p3382_p6 = pneg %p3381_p10 }
  0x2b   : > { %p3389_p0 = pnand %p3388_p12, %p3382_p6 }
  0x2d   : > { %3392 = shalt.err (!%p3389_p0)
}
  0x2e   : > { %s3602_s17 = smov 64   ;;  %s3603_s18 = smov 4  }
  0x2f   : > { %3181 = dma.hbm_to_vmem [thread:$0]  (!%p3726_p11), %s4336_s1, 512, %s3719_s11, [#allocation8], %s3602_s17, %s3602_s17, %s3603_s18  }
  0x30   : > { %s3393_s13 = scalar_lea.hbm %s4338_s3, 512 }
  0x31   : > { %p3394_p1 = scmp.ne.s32.totalorder %s4338_s3, %s3393_s13  ;;  %p3400_p10 = scmp.lt.u32.totalorder %s3393_s13, %s4338_s3 }
  0x33   : > { %p3396_p4 = pnand %p3394_p1, %p3742_p13 }
  0x35   : > { %p3397_p6 = pneg %p3396_p4 }
  0x37   : > { %p3402_p3 = pnand %p3400_p10, %p3397_p6 }
  0x39   : > { %3405 = shalt.err (!%p3402_p3)
}
  0x3a   : > { %s3406_s11 = scalar_lea.vmem %s3730_s14, 512  ;;  %p3414_p12 = scmp.lt.s32.totalorder %s3730_s14, %s3730_s14 }
  0x3b   : > { %p3407_p5 = scmp.ne.s32.totalorder %s3730_s14, %s3406_s11  ;;  %p3415_p0 = scmp.lt.s32.totalorder %s3406_s11, %s3406_s11 }
  0x3d   : > { %p3409_p7 = pnand %p3407_p5, %p3742_p13  ;;  %p3416_p1 = por %p3415_p0, %p3414_p12 }
  0x3f   : > { %p3410_p9 = pneg %p3409_p7 }
  0x41   : > { %p3417_p4 = pnand %p3416_p1, %p3410_p9 }
  0x43   : > { %3420 = shalt.err (!%p3417_p4)
}
  0x44   : > { %3187 = dma.hbm_to_vmem [thread:$0]  (!%p3726_p11), %s4338_s3, 512, %s3730_s14, [#allocation11], %s3602_s17, %s3602_s17, %s3603_s18  }
  0x45   : > { %s3421_s20 = scalar_lea.hbm %s4337_s2, 512 }
  0x46   : > { %p3422_p6 = scmp.ne.s32.totalorder %s4337_s2, %s3421_s20  ;;  %p3428_p5 = scmp.lt.u32.totalorder %s3421_s20, %s4337_s2 }
  0x48   : > { %p3424_p10 = pnand %p3422_p6, %p3742_p13 }
  0x4a   : > { %p3425_p3 = pneg %p3424_p10 }
  0x4c   : > { %p3430_p7 = pnand %p3428_p5, %p3425_p3 }
  0x4e   : > { %3433 = shalt.err (!%p3430_p7)
}
  0x4f   : > { %s3434_s11 = scalar_lea.vmem %s226_s16, 512  ;;  %p3442_p1 = scmp.lt.s32.totalorder %s226_s16, %s226_s16 }
  0x50   : > { %p3435_p9 = scmp.ne.s32.totalorder %s226_s16, %s3434_s11  ;;  %p3443_p4 = scmp.lt.s32.totalorder %s3434_s11, %s3434_s11 }
  0x52   : > { %p3437_p12 = pnand %p3435_p9, %p3742_p13  ;;  %p3444_p8 = por %p3443_p4, %p3442_p1 }
  0x54   : > { %p3438_p0 = pneg %p3437_p12 }
  0x56   : > { %p3445_p2 = pnand %p3444_p8, %p3438_p0 }
  0x58   : > { %3448 = shalt.err (!%p3445_p2)
}
  0x59   : > { %3184 = dma.hbm_to_vmem [thread:$0]  (!%p3726_p11), %s4337_s2, 512, %s226_s16, [#allocation8], %s3602_s17, %s3602_s17, %s3603_s18  }
  0x5a   : > { %s3604_s21 = smov [#allocation12]   ;;  %s3449_s27 = scalar_lea.hbm %s4339_s4, 512 }
  0x5b   : > { %s251_s8 = sshll.u32 %s3604_s21, 4  ;;  %p3450_p2 = scmp.ne.s32.totalorder %s4339_s4, %s3449_s27  ;;  %s252_s8 = int_to_ptr.vmem [resolvable:$true] %s251_s8 }
  0x5c   : > { %p3456_p10 = scmp.lt.u32.totalorder %s3449_s27, %s4339_s4 }
  0x5d   : > { %p3452_p8 = pnand %p3450_p2, %p3742_p13 }
  0x5f   : > { %p3453_p6 = pneg %p3452_p8 }
  0x61   : > { %p3458_p3 = pnand %p3456_p10, %p3453_p6 }
  0x63   : > { %3461 = shalt.err (!%p3458_p3)
}
  0x64   : > { %s3462_s16 = scalar_lea.vmem %s252_s8, 512  ;;  %p3470_p12 = scmp.lt.s32.totalorder %s252_s8, %s252_s8 }
  0x65   : > { %p3463_p5 = scmp.ne.s32.totalorder %s252_s8, %s3462_s16  ;;  %p3471_p0 = scmp.lt.s32.totalorder %s3462_s16, %s3462_s16 }
  0x67   : > { %p3465_p7 = pnand %p3463_p5, %p3742_p13  ;;  %p3472_p1 = por %p3471_p0, %p3470_p12 }
  0x69   : > { %p3466_p9 = pneg %p3465_p7 }
  0x6b   : > { %p3473_p4 = pnand %p3472_p1, %p3466_p9 }
  0x6d   : > { %3476 = shalt.err (!%p3473_p4)
}
  0x6e   : > { %3190 = dma.hbm_to_vmem [thread:$0]  (!%p3726_p11), %s4339_s4, 512, %s252_s8, [#allocation11], %s3602_s17, %s3602_s17, %s3603_s18  }
  0x6f   : > { %s36_s28 = sadd.s32 1, %s3593_s25  ;;  %s43_s12 = sadd.s32 1, %s3585_s23 }
  0x70   : > { %p38_p13 = scmp.ge.s32.totalorder %s36_s28, 2  ;;  %p50_p2 = scmp.ne.s32.totalorder %s3585_s23, %s3581_s22 }
  0x71   : > { %p51_p8 = scmp.eq.s32.totalorder %s3597_s26, 0  ;;  %p3203_p6 = scmp.lt.s32.totalorder %s3597_s26, 2 }
  0x72   : > { %s4376_s28 = smov (%p38_p13, %s36_s28), 0  ;;  %p4359_p3 = scmp.ne.s32.totalorder %s4352_s30, 0 }
  0x73   : > { %p52_p10 = por %p51_p8, %p50_p2  ;;  %s40_s19 = ssub.s32 %s3593_s25, %s4376_s28 }
  0x74   : > { %p3845_p5 = por %p4359_p3, %p50_p2  ;;  %s268_s20 = sand.u32 1, %s3585_s23  }
  0x75   : > { %p41_p7 = scmp.eq.s32.totalorder %s40_s19, 0  ;;  %s2886_s8 = sshll.u32 %s268_s20, 3 }
  0x76   : > { %s2960_s27 = sshll.u32 %s3593_s25, 7  ;;  %s272_s30 = scalar_lea.vmem [#allocation4], %s2886_s8 }
  0x77   : > { %s3854_s10 = scalar_select %p41_p7, %s3585_s23, %s43_s12  }
  0x78   : > { %s3859_s11 = scalar_lea.hbm %s4335_s0, %s2960_s27  ;;  %s279_s16 = sshll.u32 %s272_s30, 4  ;;  %s3867_s16 = int_to_ptr.vmem [resolvable:$true] %s279_s16 }
  0x79   : > { %p3863_p11 = pnand %p3203_p6, %p52_p10  ;;  %s3869_s6 = scalar_lea.sflag [#allocation5], %s268_s20 }
  0x7a   : > { %s3477_s12 = scalar_lea.hbm %s3859_s11, 128  ;;  %s3482_s27 = scalar_lea.hbm %s4335_s0, 256 }
  0x7b   : > { %p3478_p9 = scmp.ne.s32.totalorder %s3859_s11, %s3477_s12  ;;  %p3479_p12 = pneg %p3863_p11 }
  0x7c   : > { %p3483_p4 = scmp.lt.u32.totalorder %s3859_s11, %s4335_s0  ;;  %p3484_p13 = scmp.lt.u32.totalorder %s3482_s27, %s3477_s12 }
  0x7d   : > { %p3480_p0 = pnand %p3479_p12, %p3478_p9  ;;  %p3486_p8 = scmp.lt.u32.totalorder %s3477_s12, %s3859_s11 }
  0x7e   : > { %p3485_p2 = por %p3484_p13, %p3483_p4 }
  0x7f   : > { %p3481_p1 = pneg %p3480_p0 }
  0x80   : > { %p3487_p6 = por %p3486_p8, %p3485_p2 }
  0x82   : > { %p3488_p10 = pnand %p3487_p6, %p3481_p1 }
  0x84   : > { %3491 = shalt.err (!%p3488_p10)
}
  0x85   : > { %s3492_s20 = scalar_lea.vmem %s3867_s16, 128  ;;  %s3605_s30 = smov [#allocation4]  }
  0x86   : > { %p3493_p3 = scmp.ne.s32.totalorder %s3867_s16, %s3492_s20  ;;  %s3497_s19 = sshll.u32 %s3605_s30, 4  ;;  %s3498_s19 = int_to_ptr.vmem [resolvable:$false] %s3497_s19 }
  0x87   : > { %s3499_s8 = scalar_lea.vmem %s3498_s19, 256  ;;  %p3500_p0 = scmp.lt.s32.totalorder %s3867_s16, %s3498_s19 }
  0x88   : > { %p3495_p7 = pnand %p3493_p3, %p3479_p12  ;;  %p3501_p4 = scmp.lt.s32.totalorder %s3499_s8, %s3492_s20 }
  0x8a   : > { %p3496_p9 = pneg %p3495_p7  ;;  %p3502_p13 = por %p3501_p4, %p3500_p0 }
  0x8c   : > { %p3503_p2 = pnand %p3502_p13, %p3496_p9 }
  0x8e   : > { %3506 = shalt.err (!%p3503_p2)
}
  0x8f   : > { %3194 = dma.hbm_to_vmem [thread:$0]  (!%p3863_p11), %s3859_s11, 128, %s3867_s16, %s3869_s6, %s3602_s17, %s3602_s17, %s3603_s18  }
  0x90   : > { %p4362_p12 = scmp.ne.s32.totalorder %s4356_s9, 0 }
  0x91   : > { %s3903_s12 = sand.u32 (!%p4362_p12), 1, %s3581_s22   ;;  %p4363_p1 = scmp.ne.s32.totalorder (!%p4362_p12), %s4353_s7, 0 }
  0x92   : > { %291 = sbr.rel (%p4362_p12) target bundleno = 1586 (0x632), region = 44  ;;  %s2890_s27 = sshll.u32 (!%p4362_p12), %s3903_s12, 3 }
  0x93   : > { %s294_s13 = scalar_lea.sflag (!%p4362_p12), [#allocation5], %s3903_s12  ;;  %s3907_s15 = scalar_lea.vmem (!%p4362_p12), [#allocation4], %s2890_s27 }
  0x99   : > { %3560 = dma.done.wait (%p4363_p1), %s294_s13, 128  }
  0x9a   : > { %3562 = vsyncadd (%p4363_p1), %s294_s13, 4294967168  ;;  %p4364_p11 = scmp.ne.s32.totalorder %s4351_s29, 0 }
  0x9c   : > { %3564 = dma.done.wait (%p4364_p11), [#allocation8], 1024  }
  0x9d   : > { %3566 = vsyncadd (%p4364_p11), [#allocation8], 4294966272 }
  0x9e   : > { %3568 = dma.done.wait (%p4364_p11), [#allocation11], 1024  }
  0x9f   : > { %3570 = vsyncadd (%p4364_p11), [#allocation11], 4294966272  ;;  %v3606_v0 = vmov 0.0   ;;  %vm3607_vm0 = vmmov 0   ;;  %v3283_v1 = vld [vmem:[#allocation9] sm:$0xff]   ;;  %v3284_v2 = vld [vmem:[#allocation9 + $0x8] sm:$0xff]   ;;  %v612_v35 = vlaneseq }
  0xa0   : > { %3014 = vmatprep.subr.bf16.mxu0 %v3606_v0  ;;  %3022 = vmatprep.mubr.msk.bf16.mxu0 %vm3607_vm0, %v3606_v0  ;;  %v3285_v3 = vld [vmem:[#allocation9 + $0x10] sm:$0xff]   ;;  %v3286_v4 = vld [vmem:[#allocation9 + $0x18] sm:$0xff]   ;;  %v3293_v5 = vld [vmem:[#allocation10] sm:$0xff]   ;;  %vm387_vm1 = vcmask 523264   ;;  %s3608_s29 = smov 104   ;;  %s3609_s7 = smov 120  }
  0xa1   : > { %3026 = vmatprep.subr.bf16.mxu1 %v3606_v0  ;;  %3034 = vmatprep.mubr.msk.bf16.mxu1 %vm3607_vm0, %v3606_v0  ;;  %v3287_v6 = vld [vmem:[%s3907_s15] sm:$0xff]   ;;  %v3294_v7 = vld [vmem:[#allocation10 + $0x8] sm:$0xff]   ;;  %v3288_v8 = vld [vmem:[#allocation7] sm:$0xff]   ;;  %s3610_s9 = smov 96   ;;  %s3611_s17 = smov 112   ;;  %v613_v40 = vshrl.u32 %v612_v35, 7 }
  0xa2   : > { %3015 = vmatpush3.bf16.msra.mxu0 %v3283_v1  ;;  %3027 = vmatpush3.bf16.msra.mxu1 %v3293_v5  ;;  %v3295_v9 = vld [vmem:[#allocation10 + $0x10] sm:$0xff]   ;;  %v3289_v10 = vld [vmem:[#allocation7 + $0x8] sm:$0xff]   ;;  %v3296_v11 = vld [vmem:[#allocation10 + $0x18] sm:$0xff]   ;;  %s3612_s18 = smov 80   ;;  %s3613_s11 = smov 88   ;;  %vm477_vm2 = vcmask 125952  }
  0xa3   : > { %3016 = vmatprep.subr.bf16.mxu0 %v3606_v0  ;;  %3028 = vmatprep.subr.bf16.mxu1 %v3606_v0  ;;  %v3290_v12 = vld [vmem:[#allocation7 + $0x10] sm:$0xff]   ;;  %v3291_v13 = vld [vmem:[#allocation7 + $0x18] sm:$0xff]   ;;  %s3614_s16 = smov 72   ;;  %v3615_v33 = vmov 1983009808   ;;  %vm1365_vm3 = vcmask 1043456  }
  0xa4   : > { %v3292_v14 = vld [vmem:[%s3907_s15] sm:$0xff]   ;;  %v610_v34 = vunpack.c.l.s4 %v3615_v33  ;;  %v3616_v37 = vmov 1934713408   ;;  %vm911_vm4 = vcmask 64512   ;;  %vm1739_vm5 = vcmask 130048   ;;  %s3617_s14 = smov 32  }
  0xa5   : > { %v642_v38 = vunpack.c.l.s4 %v3616_v37  ;;  %s3618_s6 = smov 16   ;;  %s3619_s20 = smov 40   ;;  %vm2639_vm6 = vcmask 195584   ;;  %vm2642_vm7 = vcmask 261120   ;;  %vm2645_vm8 = vcmask 326656  }
  0xa6   : > { %3017 = vmatpush3.bf16.msra.mxu0 %v3284_v2  ;;  %3029 = vmatpush3.bf16.msra.mxu1 %v3294_v7  ;;  %v611_v39 = vunpack.c.0.s8 %v610_v34  ;;  %s3620_s30 = smov 8   ;;  %s3621_s19 = smov 56   ;;  %vm2648_vm9 = vcmask 392192   ;;  %vm2651_vm10 = vcmask 457728  }
  0xa7   : > { %3018 = vmatprep.subr.bf16.mxu0 %v3606_v0  ;;  %3030 = vmatprep.subr.bf16.mxu1 %v3606_v0  ;;  %v643_v48 = vunpack.c.0.s8 %v642_v38  ;;  %s3622_s8 = smov 24   ;;  %s3623_s27 = smov 48  }
  0xa8   : > { %v3959_v51 = vsub.s32 %v611_v39, %v613_v40  ;;  %s2895_s13 = sshll.u32 %s3903_s12, 4 }
  0xa9   : > { %v3961_v62 = vsub.s32 %v643_v48, %v613_v40 }
  0xaa   : > { %3019 = vmatpush3.bf16.msra.mxu0 %v3285_v3  ;;  %3031 = vmatpush3.bf16.msra.mxu1 %v3295_v9 }
  0xab   : > { %3020 = vmatprep.subr.bf16.mxu0 %v3606_v0  ;;  %3032 = vmatprep.subr.bf16.mxu1 %v3606_v0 }
  0xae   : > { %3021 = vmatpush3.bf16.msra.mxu0 %v3286_v4  ;;  %3033 = vmatpush3.bf16.msra.mxu1 %v3296_v11 }
  0xaf   : > { %3038 = vmatprep.subr.bf16.mxu0 %v3606_v0  ;;  %3050 = vmatprep.subr.bf16.mxu1 %v3606_v0 }
  0xb1   : > { %3023 = vmatmul.mubr.msk.bf16.vlgmr.msra.gmra.mrb[0].mxu0 %vm387_vm1, %v3287_v6  ;;  %3035 = vmatmul.mubr.msk.bf16.vlgmr.msra.gmra.mrb[0].mxu1 %vm387_vm1, %v3287_v6 }
  0xb2   : > { %3039 = vmatpush3.bf16.msra.mxu0 %v3288_v8  ;;  %3046 = vmatprep.mubr.msk.bf16.mxu0 %vm3607_vm0, %v3606_v0 }
  0xb3   : > { %3040 = vmatprep.subr.bf16.mxu0 %v3606_v0  ;;  %3052 = vmatprep.mubr.msk.bf16.mxu1 %vm3607_vm0, %v3606_v0 }
  0xb6   : > { %3041 = vmatpush3.bf16.msra.mxu0 %v3289_v10 }
  0xb7   : > { %3042 = vmatprep.subr.bf16.mxu0 %v3606_v0 }
  0xba   : > { %3043 = vmatpush3.bf16.msra.mxu0 %v3290_v12 }
  0xbb   : > { %3044 = vmatprep.subr.bf16.mxu0 %v3606_v0 }
  0xbe   : > { %3045 = vmatpush3.bf16.msra.mxu0 %v3291_v13 }
  0xbf   : > { %3074 = vmatprep.subr.bf16.mxu0 %v3606_v0 }
  0xc1   : > { %3047 = vmatmul.mubr.msk.bf16.vlgmr.msra.gmra.mrb[4].mxu0 %vm387_vm1, %v3292_v14 }
  0xc2   : > { %3076 = vmatprep.mubr.msk.bf16.mxu0 %vm3607_vm0, %v3606_v0 }
 0x184   : > { %v425_v15 = vpop.f32.mrb[0].mxu0  ;;  %v552_v25 = vpop.f32.mrb[0].mxu1 }
 0x185   : > { %v3024_v16 = vpop.f32.mrb[1].mxu0  ;;  %v3036_v26 = vpop.f32.mrb[1].mxu1 }
 0x186   : > { %v428_v17 = vpop.f32.mrb[2].mxu0  ;;  %v555_v27 = vpop.f32.mrb[2].mxu1 }
 0x187   : > { %v432_v18 = vpack.c.bf16 %v428_v17, %v425_v15  ;;  %v3025_v19 = vpop.f32.mrb[3].mxu0  ;;  %v3950_v28 = vpack.c.bf16 %v555_v27, %v552_v25  ;;  %v3037_v29 = vpop.f32.mrb[3].mxu1 }
 0x194   : > { %v1002_v20 = vpop.f32.mrb[4].mxu0 }
 0x195   : > { %v3048_v21 = vpop.f32.mrb[5].mxu0 }
 0x196   : > { %v1005_v22 = vpop.f32.mrb[6].mxu0 }
 0x197   : > { %v1009_v23 = vpack.c.bf16 %v1005_v22, %v1002_v20  ;;  %v3049_v24 = vpop.f32.mrb[7].mxu0 }
 0x199   : > { %1015 = vrot.lane.b32.xlu1 %v1009_v23, %s3608_s29  ;;  %1011 = vrot.lane.b32.xlu0 %v1009_v23, %s3609_s7  ;;  %v1029_v49 = vshrl.u32 %v1009_v23, 16 }
 0x19d   : > { %1017 = vrot.lane.b32.xlu1 %v1009_v23, %s3610_s9  ;;  %1013 = vrot.lane.b32.xlu0 %v1009_v23, %s3611_s17 }
 0x1a1   : > { %1021 = vrot.lane.b32.xlu1 %v1009_v23, %s3612_s18  ;;  %1019 = vrot.lane.b32.xlu0 %v1009_v23, %s3613_s11 }
 0x1a5   : > { %1023 = vrot.lane.b32.xlu0 %v1009_v23, %s3614_s16 }
 0x1a9   : > { %561 = vrot.lane.b32.xlu0 %v3950_v28, %s3609_s7  ;;  %s341_s7 = scalar_lea.vmem [#allocation13], %s2895_s13 }
 0x1ad   : > { %563 = vrot.lane.b32.xlu0 %v3950_v28, %s3611_s17  ;;  %s2961_s17 = sshll.u32 %s3589_s24, 8  ;;  %s2739_s24 = scalar_lea.sflag [#allocation6], %s3903_s12 }
 0x1b1   : > { %565 = vrot.lane.b32.xlu0 %v3950_v28, %s3608_s29 }
 0x1b5   : > { %567 = vrot.lane.b32.xlu0 %v3950_v28, %s3610_s9  ;;  %s2754_s9 = sshll.u32 %s341_s7, 4  ;;  %s4278_s9 = int_to_ptr.vmem [resolvable:$true] %s2754_s9 }
 0x1b9   : > { %569 = vrot.lane.b32.xlu0 %v3950_v28, %s3613_s11 }
 0x1bd   : > { %571 = vrot.lane.b32.xlu0 %v3950_v28, %s3612_s18 }
 0x1c1   : > { %573 = vrot.lane.b32.xlu0 %v3950_v28, %s3614_s16  ;;  %s4365_s16 = sld [smem:[#allocation20_spill]] }
 0x1c4   : > { %433 = vxpose.xlu1.c.b16.start.end [1/1] (short) (narrow) %v432_v18, 64 }
 0x20b   : > { %v1016_v30 = vpop.permute.xlu1 %1015  ;;  %v1012_v31 = vpop.permute.xlu0 %1011 }
 0x20c   : > { %v1027_v44 = vpack.i.b16 %v1012_v31, %v1009_v23  ;;  %v1030_v45 = vshrl.u32 %v1012_v31, 16  ;;  %v1038_v53 = vshrl.u32 %v1016_v30, 16 }
 0x20e   : > { %v1031_v61 = vpack.i.b16 %v1030_v45, %v1029_v49 }
 0x20f   : > { %v1014_v32 = vpop.permute.xlu0 %1013  ;;  %v1018_v36 = vpop.permute.xlu1 %1017 }
 0x210   : > { %v1045_v46 = vshrl.u32 %v1018_v36, 16  ;;  %v1037_v50 = vshrl.u32 %v1014_v32, 16  ;;  %v1035_v57 = vpack.i.b16 %v1016_v30, %v1014_v32 }
 0x212   : > { %v1039_v63 = vpack.i.b16 %v1038_v53, %v1037_v50 }
 0x213   : > { %v1020_v41 = vpop.permute.xlu0 %1019  ;;  %v1022_v47 = vpop.permute.xlu1 %1021 }
 0x214   : > { %v1043_v42 = vpack.i.b16 %v1020_v41, %v1018_v36  ;;  %v1046_v43 = vshrl.u32 %v1020_v41, 16  ;;  %v1053_v58 = vshrl.u32 %v1022_v47, 16 }
 0x216   : > { %v1047_v54 = vpack.i.b16 %v1046_v43, %v1045_v46  ;;  %v1057_v55 = vcombine.low %v1027_v44, %v1043_v42  ;;  %v1058_v56 = vcombine.high %v1027_v44, %v1043_v42 }
 0x217   : > { %v1024_v52 = vpop.permute.xlu0 %1023 }
 0x218   : > { %v1051_v59 = vpack.i.b16 %v1024_v52, %v1022_v47  ;;  %v1054_v60 = vshrl.u32 %v1024_v52, 16  ;;  %v1065_v4 = vrot.slane %v1057_v55, %v3959_v51  ;;  %v1072_v5 = vrot.slane %v1058_v56, %v3959_v51 }
 0x219   : > { %v1125_v6 = vcombine.low %v1031_v61, %v1047_v54  ;;  %v1126_v7 = vcombine.high %v1031_v61, %v1047_v54 }
 0x21a   : > { %v1055_v1 = vpack.i.b16 %v1054_v60, %v1053_v58  ;;  %v1073_v2 = vcombine.low %v1035_v57, %v1051_v59  ;;  %v1074_v3 = vcombine.high %v1035_v57, %v1051_v59 }
 0x21b   : > { %v1133_v16 = vrot.slane %v1125_v6, %v3959_v51  ;;  %v1140_v17 = vrot.slane %v1126_v7, %v3959_v51 }
 0x21c   : > { %v1081_v8 = vrot.slane %v1073_v2, %v3959_v51  ;;  %v1088_v9 = vrot.slane %v1074_v3, %v3959_v51  ;;  %v1141_v10 = vcombine.low %v1039_v63, %v1055_v1  ;;  %v1142_v11 = vcombine.high %v1039_v63, %v1055_v1 }
 0x21e   : > { %v1089_v12 = vcombine.low %v1065_v4, %v1081_v8  ;;  %v1090_v13 = vcombine.high %v1065_v4, %v1081_v8  ;;  %v1105_v14 = vcombine.low %v1072_v5, %v1088_v9  ;;  %v1106_v15 = vcombine.high %v1072_v5, %v1088_v9 }
 0x21f   : > { %v1149_v18 = vrot.slane %v1141_v10, %v3959_v51  ;;  %v1156_v19 = vrot.slane %v1142_v11, %v3959_v51 }
 0x220   : > { %v1097_v20 = vrot.slane %v1089_v12, %v3961_v62  ;;  %v1104_v21 = vrot.slane %v1090_v13, %v3961_v62  ;;  %v1113_v22 = vrot.slane %v1105_v14, %v3961_v62  ;;  %v1120_v23 = vrot.slane %v1106_v15, %v3961_v62 }
 0x221   : > { %v1157_v24 = vcombine.low %v1133_v16, %v1149_v18  ;;  %v1158_v25 = vcombine.high %v1133_v16, %v1149_v18  ;;  %v1173_v26 = vcombine.low %v1140_v17, %v1156_v19  ;;  %v1174_v27 = vcombine.high %v1140_v17, %v1156_v19 }
 0x222   : > { %v1193_v33 = vcombine.low %v1097_v20, %v1104_v21  ;;  %v2925_v34 = vcombine.high %v1097_v20, %v1104_v21  ;;  %v1209_v35 = vcombine.low %v1113_v22, %v1120_v23  ;;  %v2926_v36 = vcombine.high %v1113_v22, %v1120_v23 }
 0x223   : > { %v1165_v29 = vrot.slane %v1157_v24, %v3961_v62  ;;  %v1172_v30 = vrot.slane %v1158_v25, %v3961_v62  ;;  %v1181_v31 = vrot.slane %v1173_v26, %v3961_v62  ;;  %v1188_v32 = vrot.slane %v1174_v27, %v3961_v62 }
 0x224   : > { %v1200_v45 = vrot.slane %v1193_v33, %v3959_v51  ;;  %v1208_v46 = vrot.slane %v2925_v34, %v3959_v51  ;;  %v1216_v47 = vrot.slane %v1209_v35, %v3959_v51  ;;  %v1224_v48 = vrot.slane %v2926_v36, %v3959_v51 }
 0x225   : > { %v1261_v37 = vcombine.low %v1165_v29, %v1172_v30  ;;  %v2927_v38 = vcombine.high %v1165_v29, %v1172_v30  ;;  %v1277_v39 = vcombine.low %v1181_v31, %v1188_v32  ;;  %v2928_v40 = vcombine.high %v1181_v31, %v1188_v32 }
 0x226   : > { %v1225_v55 = vcombine.low %v1200_v45, %v1208_v46  ;;  %v1241_v56 = vcombine.low %v1216_v47, %v1224_v48  ;;  %v1226_v9 = vcombine.high %v1200_v45, %v1208_v46  ;;  %v1242_v10 = vcombine.high %v1216_v47, %v1224_v48 }
 0x227   : > { %v1268_v41 = vrot.slane %v1261_v37, %v3959_v51  ;;  %v1276_v42 = vrot.slane %v2927_v38, %v3959_v51  ;;  %v1284_v43 = vrot.slane %v1277_v39, %v3959_v51  ;;  %v1292_v44 = vrot.slane %v2928_v40, %v3959_v51 }
 0x228   : > { %v1233_v63 = vrot.slane %v1225_v55, %v3961_v62  ;;  %v1249_v1 = vrot.slane %v1241_v56, %v3961_v62  ;;  %v1240_v21 = vrot.slane %v1226_v9, %v3961_v62  ;;  %v1256_v22 = vrot.slane %v1242_v10, %v3961_v62 }
 0x229   : > { %v1293_v50 = vcombine.low %v1268_v41, %v1276_v42  ;;  %v1309_v52 = vcombine.low %v1284_v43, %v1292_v44  ;;  %v1294_v2 = vcombine.high %v1268_v41, %v1276_v42  ;;  %v1310_v4 = vcombine.high %v1284_v43, %v1292_v44  ;;  %v562_v44 = vpop.permute.xlu0 %561 }
 0x22a   : > { %v441_v49 = vpop.trf.xlu1  ;;  %v1257_v12 = vcombine.low %v1233_v63, %v1249_v1  ;;  %v1259_v30 = vcombine.low %v1240_v21, %v1256_v22  ;;  %v1258_v38 = vcombine.high %v1233_v63, %v1249_v1  ;;  %v1260_v39 = vcombine.high %v1240_v21, %v1256_v22 }
 0x22b   : > { %v2902_v53 = vcombine.low %v441_v49, %v441_v49  ;;  %v2903_v54 = vcombine.high %v441_v49, %v441_v49  ;;  %v1301_v60 = vrot.slane %v1293_v50, %v3961_v62  ;;  %v1317_v61 = vrot.slane %v1309_v52, %v3961_v62 }
 0x22c   : > { %v1308_v15 = vrot.slane %v1294_v2, %v3961_v62  ;;  %v1324_v19 = vrot.slane %v1310_v4, %v3961_v62  ;;  %v1332_v29 = vshrl.u32 %v1257_v12, 16  ;;  %v1338_v47 = vshrl.u32 %v1258_v38, 16 }
 0x22d   : > { %478 = vst.msk [vmem:[#allocation2] sm:$0xf] %vm477_vm2, %v2902_v53  ;;  %479 = vst.msk [vmem:[#allocation2 + $0x4] sm:$0xf] %vm477_vm2, %v2903_v54  ;;  %v1325_v7 = vcombine.low %v1301_v60, %v1317_v61  ;;  %v1326_v36 = vcombine.high %v1301_v60, %v1317_v61  ;;  %v564_v48 = vpop.permute.xlu0 %563  ;;  %v1344_v55 = vshrl.u32 %v1259_v30, 16  ;;  %v579_v61 = vshrl.u32 %v3950_v28, 16 }
 0x22e   : > { %v442_v57 = vpop.trf.xlu1  ;;  %v1327_v24 = vcombine.low %v1308_v15, %v1324_v19  ;;  %v1328_v37 = vcombine.high %v1308_v15, %v1324_v19  ;;  %v577_v63 = vpack.i.b16 %v562_v44, %v3950_v28  ;;  %v580_v1 = vshrl.u32 %v562_v44, 16 }
 0x22f   : > { %v2904_v58 = vcombine.low %v442_v57, %v442_v57  ;;  %v2905_v59 = vcombine.high %v442_v57, %v442_v57  ;;  %v1331_v16 = vpack.i.b16 %v1325_v7, %v1257_v12  ;;  %v1333_v23 = vshrl.u32 %v1325_v7, 16 }
 0x230   : > { %v1343_v32 = vpack.i.b16 %v1327_v24, %v1259_v30  ;;  %v1337_v41 = vpack.i.b16 %v1326_v36, %v1258_v38  ;;  %v1349_v42 = vpack.i.b16 %v1328_v37, %v1260_v39  ;;  %v1339_v45 = vshrl.u32 %v1326_v36, 16 }
 0x231   : > { %480 = vst.msk [vmem:[#allocation2 + $0x8] sm:$0xf] %vm477_vm2, %v2904_v58  ;;  %481 = vst.msk [vmem:[#allocation2 + $0xc] sm:$0xf] %vm477_vm2, %v2905_v59  ;;  %v1334_v31 = vpack.i.b16 %v1333_v23, %v1332_v29  ;;  %v566_v52 = vpop.permute.xlu0 %565  ;;  %v1345_v53 = vshrl.u32 %v1327_v24, 16  ;;  %v1351_v60 = vshrl.u32 %v1328_v37, 16  ;;  %v581_v10 = vpack.i.b16 %v580_v1, %v579_v61 }
 0x232   : > { %v443_v3 = vpop.trf.xlu1  ;;  %v1340_v49 = vpack.i.b16 %v1339_v45, %v1338_v47  ;;  %v587_v7 = vshrl.u32 %v564_v48, 16 }
 0x233   : > { %v2906_v5 = vcombine.low %v443_v3, %v443_v3  ;;  %v2907_v6 = vcombine.high %v443_v3, %v443_v3  ;;  %v1346_v57 = vpack.i.b16 %v1345_v53, %v1344_v55 }
 0x234   : > { %v1353_v8 = vld [vmem:[#allocation2] sm:$0xf]  ;;  %v1354_v14 = vld [vmem:[#allocation2 + $0x4] sm:$0xf] }
 0x235   : > { %482 = vst.msk [vmem:[#allocation2 + $0x10] sm:$0xf] %vm477_vm2, %v2906_v5  ;;  %483 = vst.msk [vmem:[#allocation2 + $0x14] sm:$0xf] %vm477_vm2, %v2907_v6  ;;  %v1367_v11 = vsel %vm1365_vm3, %v1353_v8, 0  ;;  %v1414_v20 = vsel %vm1365_vm3, %v1354_v14, 0  ;;  %v568_v56 = vpop.permute.xlu0 %567 }
 0x236   : > { %3051 = vmatpush3.bf16.msra.mxu1 %v1367_v11  ;;  %v444_v13 = vpop.trf.xlu1  ;;  %v595_v2 = vshrl.u32 %v568_v56, 16  ;;  %v1350_v5 = vshrl.u32 %v1260_v39, 16  ;;  %v588_v8 = vshrl.u32 %v566_v52, 16 }
 0x237   : > { %3056 = vmatprep.subr.bf16.mxu1 %v3606_v0  ;;  %v2908_v17 = vcombine.low %v444_v13, %v444_v13  ;;  %v2909_v18 = vcombine.high %v444_v13, %v444_v13  ;;  %v585_v13 = vpack.i.b16 %v566_v52, %v564_v48 }
 0x238   : > { %v1355_v26 = vld [vmem:[#allocation2 + $0x8] sm:$0xf]  ;;  %v1356_v40 = vld [vmem:[#allocation2 + $0xc] sm:$0xf]  ;;  %v1352_v9 = vpack.i.b16 %v1351_v60, %v1350_v5 }
 0x239   : > { %3053 = vmatmul.mubr.msk.bf16.vlgmr.msra.gmra.mrb[4].mxu1 %vm911_vm4, %v1331_v16  ;;  %484 = vst.msk [vmem:[#allocation2 + $0x18] sm:$0xf] %vm477_vm2, %v2908_v17  ;;  %485 = vst.msk [vmem:[#allocation2 + $0x1c] sm:$0xf] %vm477_vm2, %v2909_v18  ;;  %v1461_v33 = vsel %vm1365_vm3, %v1355_v26, 0  ;;  %v1508_v43 = vsel %vm1365_vm3, %v1356_v40, 0  ;;  %v570_v59 = vpop.permute.xlu0 %569  ;;  %v589_v16 = vpack.i.b16 %v588_v8, %v587_v7 }
 0x23a   : > { %3057 = vmatpush3.bf16.msra.mxu1 %v1414_v20  ;;  %3058 = vmatprep.mubr.msk.bf16.mxu1 %vm3607_vm0, %v3606_v0  ;;  %v593_v3 = vpack.i.b16 %v570_v59, %v568_v56  ;;  %v596_v4 = vshrl.u32 %v570_v59, 16 }
 0x23b   : > { %3062 = vmatprep.subr.bf16.mxu1 %v3606_v0 }
 0x23c   : > { %v1357_v25 = vld [vmem:[#allocation2 + $0x10] sm:$0xf]  ;;  %v1358_v46 = vld [vmem:[#allocation2 + $0x14] sm:$0xf]  ;;  %v597_v11 = vpack.i.b16 %v596_v4, %v595_v2  ;;  %v607_v12 = vcombine.low %v577_v63, %v593_v3  ;;  %v608_v14 = vcombine.high %v577_v63, %v593_v3 }
 0x23d   : > { %v1555_v27 = vsel %vm1365_vm3, %v1357_v25, 0  ;;  %v1602_v50 = vsel %vm1365_vm3, %v1358_v46, 0  ;;  %v572_v6 = vpop.permute.xlu0 %571 }
 0x23e   : > { %3075 = vmatpush3.bf16.msra.mxu0 %v1555_v27  ;;  %v603_v15 = vshrl.u32 %v572_v6, 16  ;;  %v615_v19 = vrot.slane %v607_v12, %v3959_v51  ;;  %v675_v20 = vcombine.low %v581_v10, %v597_v11  ;;  %v676_v21 = vcombine.high %v581_v10, %v597_v11 }
 0x23f   : > { %3086 = vmatprep.subr.bf16.mxu0 %v3606_v0  ;;  %v622_v22 = vrot.slane %v608_v14, %v3959_v51 }
 0x240   : > { %v1359_v34 = vld [vmem:[#allocation2 + $0x18] sm:$0xf]  ;;  %v1360_v54 = vld [vmem:[#allocation2 + $0x1c] sm:$0xf] }
 0x241   : > { %3059 = vmatmul.mubr.msk.bf16.vlgmr.msra.gmra.mrb[8].mxu1 %vm911_vm4, %v1334_v31  ;;  %3077 = vmatmul.mubr.msk.bf16.vlgmr.msra.gmra.mrb[8].mxu0 %vm911_vm4, %v1343_v32  ;;  %v1649_v35 = vsel %vm1365_vm3, %v1359_v34, 0  ;;  %v1696_v58 = vsel %vm1365_vm3, %v1360_v54, 0  ;;  %v574_v28 = vpop.permute.xlu0 %573  ;;  %v683_v31 = vrot.slane %v675_v20, %v3959_v51  ;;  %v690_v32 = vrot.slane %v676_v21, %v3959_v51 }
 0x242   : > { %3063 = vmatpush3.bf16.msra.mxu1 %v1461_v33  ;;  %3087 = vmatpush3.bf16.msra.mxu0 %v1649_v35  ;;  %v601_v17 = vpack.i.b16 %v574_v28, %v572_v6  ;;  %v604_v18 = vshrl.u32 %v574_v28, 16 }
 0x243   : > { %3064 = vmatprep.mubr.msk.bf16.mxu1 %vm3607_vm0, %v3606_v0  ;;  %3068 = vmatprep.subr.bf16.mxu1 %v3606_v0 }
 0x244   : > { %3088 = vmatprep.mubr.msk.bf16.mxu0 %vm3607_vm0, %v3606_v0  ;;  %3098 = vmatprep.subr.bf16.mxu0 %v3606_v0  ;;  %v605_v23 = vpack.i.b16 %v604_v18, %v603_v15  ;;  %v623_v24 = vcombine.low %v585_v13, %v601_v17  ;;  %v624_v25 = vcombine.high %v585_v13, %v601_v17 }
 0x246   : > { %v631_v26 = vrot.slane %v623_v24, %v3959_v51  ;;  %v638_v27 = vrot.slane %v624_v25, %v3959_v51  ;;  %v691_v29 = vcombine.low %v589_v16, %v605_v23  ;;  %v692_v30 = vcombine.high %v589_v16, %v605_v23 }
 0x248   : > { %v639_v33 = vcombine.low %v615_v19, %v631_v26  ;;  %v640_v34 = vcombine.high %v615_v19, %v631_v26  ;;  %v655_v35 = vcombine.low %v622_v22, %v638_v27  ;;  %v656_v36 = vcombine.high %v622_v22, %v638_v27 }
 0x249   : > { %3065 = vmatmul.mubr.msk.bf16.vlgmr.msra.gmra.mrb[12].mxu1 %vm911_vm4, %v1337_v41  ;;  %3089 = vmatmul.mubr.msk.bf16.vlgmr.msra.gmra.mrb[12].mxu0 %vm911_vm4, %v1349_v42  ;;  %v699_v37 = vrot.slane %v691_v29, %v3959_v51  ;;  %v706_v38 = vrot.slane %v692_v30, %v3959_v51 }
 0x24a   : > { %3069 = vmatpush3.bf16.msra.mxu1 %v1508_v43  ;;  %3070 = vmatprep.mubr.msk.bf16.mxu1 %vm3607_vm0, %v3606_v0  ;;  %v647_v39 = vrot.slane %v639_v33, %v3961_v62  ;;  %v654_v40 = vrot.slane %v640_v34, %v3961_v62  ;;  %v663_v41 = vrot.slane %v655_v35, %v3961_v62 }
 0x24b   : > { %3080 = vmatprep.subr.bf16.mxu1 %v3606_v0  ;;  %3100 = vmatprep.mubr.msk.bf16.mxu0 %vm3607_vm0, %v3606_v0  ;;  %v670_v42 = vrot.slane %v656_v36, %v3961_v62  ;;  %v707_v43 = vcombine.low %v683_v31, %v699_v37  ;;  %v708_v44 = vcombine.high %v683_v31, %v699_v37 }
 0x24c   : > { %v723_v45 = vcombine.low %v690_v32, %v706_v38  ;;  %v724_v46 = vcombine.high %v690_v32, %v706_v38  ;;  %v743_v47 = vcombine.low %v647_v39, %v654_v40  ;;  %v2915_v48 = vcombine.high %v647_v39, %v654_v40 }
 0x24d   : > { %v715_v52 = vrot.slane %v707_v43, %v3961_v62  ;;  %v722_v53 = vrot.slane %v708_v44, %v3961_v62 }
 0x24e   : > { %v731_v54 = vrot.slane %v723_v45, %v3961_v62  ;;  %v738_v55 = vrot.slane %v724_v46, %v3961_v62  ;;  %v750_v56 = vrot.slane %v743_v47, %v3959_v51 }
 0x24f   : > { %v811_v60 = vcombine.low %v715_v52, %v722_v53  ;;  %v2917_v61 = vcombine.high %v715_v52, %v722_v53 }
 0x250   : > { %v827_v63 = vcombine.low %v731_v54, %v738_v55  ;;  %v2918_v1 = vcombine.high %v731_v54, %v738_v55 }
 0x251   : > { %3071 = vmatmul.mubr.msk.bf16.vlgmr.msra.gmra.mrb[16].mxu1 %vm911_vm4, %v1340_v49  ;;  %v759_v49 = vcombine.low %v663_v41, %v670_v42  ;;  %v818_v6 = vrot.slane %v811_v60, %v3959_v51  ;;  %v826_v7 = vrot.slane %v2917_v61, %v3959_v51 }
 0x252   : > { %3081 = vmatpush3.bf16.msra.mxu1 %v1602_v50  ;;  %3082 = vmatprep.mubr.msk.bf16.mxu1 %vm3607_vm0, %v3606_v0  ;;  %v2916_v50 = vcombine.high %v663_v41, %v670_v42  ;;  %v834_v8 = vrot.slane %v827_v63, %v3959_v51 }
 0x253   : > { %3092 = vmatprep.subr.bf16.mxu1 %v3606_v0  ;;  %v843_v14 = vcombine.low %v818_v6, %v826_v7  ;;  %v844_v15 = vcombine.high %v818_v6, %v826_v7 }
 0x254   : > { %v774_v59 = vrot.slane %v2916_v50, %v3959_v51 }
 0x255   : > { %v851_v21 = vrot.slane %v843_v14, %v3961_v62  ;;  %v858_v22 = vrot.slane %v844_v15, %v3961_v62 }
 0x259   : > { %3083 = vmatmul.mubr.msk.bf16.vlgmr.msra.gmra.mrb[20].mxu1 %vm911_vm4, %v1346_v57  ;;  %v758_v57 = vrot.slane %v2915_v48, %v3959_v51 }
 0x25a   : > { %3093 = vmatpush3.bf16.msra.mxu1 %v1696_v58  ;;  %3094 = vmatprep.mubr.msk.bf16.mxu1 %vm3607_vm0, %v3606_v0  ;;  %v766_v58 = vrot.slane %v759_v49, %v3959_v51 }
 0x25b   : > { %3104 = vmatprep.subr.bf16.mxu1 %v3606_v0  ;;  %v775_v2 = vcombine.low %v750_v56, %v758_v57  ;;  %v776_v3 = vcombine.high %v750_v56, %v758_v57 }
 0x25c   : > { %v791_v4 = vcombine.low %v766_v58, %v774_v59  ;;  %v792_v5 = vcombine.high %v766_v58, %v774_v59 }
 0x25d   : > { %v783_v10 = vrot.slane %v775_v2, %v3961_v62  ;;  %v790_v11 = vrot.slane %v776_v3, %v3961_v62 }
 0x25e   : > { %v799_v12 = vrot.slane %v791_v4, %v3961_v62  ;;  %v806_v13 = vrot.slane %v792_v5, %v3961_v62 }
 0x260   : > { %v807_v17 = vcombine.low %v783_v10, %v799_v12  ;;  %v808_v18 = vcombine.high %v783_v10, %v799_v12  ;;  %v809_v19 = vcombine.low %v790_v11, %v806_v13  ;;  %v810_v20 = vcombine.high %v790_v11, %v806_v13 }
 0x261   : > { %3095 = vmatmul.mubr.msk.bf16.vlgmr.msra.gmra.mrb[24].mxu1 %vm911_vm4, %v1352_v9  ;;  %v842_v9 = vrot.slane %v2918_v1, %v3959_v51 }
 0x262   : > { %3106 = vmatprep.mubr.msk.bf16.mxu1 %vm3607_vm0, %v3606_v0  ;;  %v883_v25 = vshrl.u32 %v807_v17, 16  ;;  %v891_v26 = vshrl.u32 %v808_v18, 16  ;;  %v899_v32 = vshrl.u32 %v809_v19, 16  ;;  %v907_v33 = vshrl.u32 %v810_v20, 16 }
 0x263   : > { %v859_v28 = vcombine.low %v834_v8, %v842_v9  ;;  %v860_v16 = vcombine.high %v834_v8, %v842_v9 }
 0x265   : > { %v867_v23 = vrot.slane %v859_v28, %v3961_v62  ;;  %v874_v24 = vrot.slane %v860_v16, %v3961_v62 }
 0x267   : > { %v875_v27 = vcombine.low %v851_v21, %v867_v23  ;;  %v876_v29 = vcombine.high %v851_v21, %v867_v23  ;;  %v877_v30 = vcombine.low %v858_v22, %v874_v24  ;;  %v878_v31 = vcombine.high %v858_v22, %v874_v24 }
 0x269   : > { %v881_v34 = vpack.i.b16 %v875_v27, %v807_v17  ;;  %v884_v35 = vshrl.u32 %v875_v27, 16  ;;  %v889_v36 = vpack.i.b16 %v876_v29, %v808_v18  ;;  %v892_v37 = vshrl.u32 %v876_v29, 16 }
 0x26a   : > { %v897_v38 = vpack.i.b16 %v877_v30, %v809_v19  ;;  %v900_v39 = vshrl.u32 %v877_v30, 16  ;;  %v905_v40 = vpack.i.b16 %v878_v31, %v810_v20  ;;  %v908_v41 = vshrl.u32 %v878_v31, 16 }
 0x26b   : > { %v885_v42 = vpack.i.b16 %v884_v35, %v883_v25  ;;  %v893_v43 = vpack.i.b16 %v892_v37, %v891_v26  ;;  %912 = vst.msk [vmem:[#allocation3] sm:$0xff] %vm911_vm4, %v881_v34  ;;  %914 = vst.msk [vmem:[#allocation3 + $0x10] sm:$0xff] %vm911_vm4, %v889_v36 }
 0x26c   : > { %v901_v44 = vpack.i.b16 %v900_v39, %v899_v32  ;;  %v909_v45 = vpack.i.b16 %v908_v41, %v907_v33  ;;  %916 = vst.msk [vmem:[#allocation3 + $0x20] sm:$0xff] %vm911_vm4, %v897_v38  ;;  %918 = vst.msk [vmem:[#allocation3 + $0x30] sm:$0xff] %vm911_vm4, %v905_v40 }
 0x26d   : > { %913 = vst.msk [vmem:[#allocation3 + $0x8] sm:$0xff] %vm911_vm4, %v885_v42  ;;  %915 = vst.msk [vmem:[#allocation3 + $0x18] sm:$0xff] %vm911_vm4, %v893_v43 }
 0x26e   : > { %917 = vst.msk [vmem:[#allocation3 + $0x28] sm:$0xff] %vm911_vm4, %v901_v44  ;;  %919 = vst.msk [vmem:[#allocation3 + $0x38] sm:$0xff] %vm911_vm4, %v909_v45 }
 0x272   : > { %v1892_v46 = vld [vmem:[#allocation3] sm:$0xff] }
 0x273   : > { %3099 = vmatpush3.bf16.msra.mxu0 %v1892_v46 }
 0x274   : > { %v1893_v47 = vld [vmem:[#allocation3 + $0x8] sm:$0xff]  ;;  %3110 = vmatprep.subr.bf16.mxu0 %v3606_v0 }
 0x275   : > { %3105 = vmatpush3.bf16.msra.mxu1 %v1893_v47 }
 0x276   : > { %3116 = vmatprep.subr.bf16.mxu1 %v3606_v0 }
 0x30c   : > { %v4087_v48 = vpop.f32.mrb[4].mxu1 }
 0x30d   : > { %v3054_v49 = vpop.f32.mrb[5].mxu1  ;;  %v1740_v50 = vsel %vm1739_vm5, %v4087_v48, -inf }
 0x30e   : > { %1741 = vmax.xlane.f32.xlu0 %v1740_v50  ;;  %v4091_v52 = vpop.f32.mrb[6].mxu1 }
 0x30f   : > { %v3055_v53 = vpop.f32.mrb[7].mxu1  ;;  %v1743_v54 = vsel %vm1739_vm5, %v4091_v52, -inf }
 0x310   : > { %1744 = vmax.xlane.f32.xlu1 %v1743_v54 }
 0x314   : > { %v4095_v55 = vpop.f32.mrb[8].mxu1  ;;  %v4097_v56 = vpop.f32.mrb[8].mxu0 }
 0x315   : > { %v3060_v57 = vpop.f32.mrb[9].mxu1  ;;  %v3078_v58 = vpop.f32.mrb[9].mxu0  ;;  %v1746_v59 = vsel %vm1739_vm5, %v4095_v55, -inf  ;;  %v1764_v18 = vsel %vm1739_vm5, %v4097_v56, -inf }
 0x316   : > { %1747 = vmax.xlane.f32.xlu1 %v1746_v59  ;;  %v4101_v60 = vpop.f32.mrb[10].mxu1  ;;  %v4103_v61 = vpop.f32.mrb[10].mxu0  ;;  %v1894_v59 = vld [vmem:[#allocation3 + $0x10] sm:$0xff] }
 0x317   : > { %v3061_v63 = vpop.f32.mrb[11].mxu1  ;;  %v3079_v1 = vpop.f32.mrb[11].mxu0  ;;  %v1749_v2 = vsel %vm1739_vm5, %v4101_v60, -inf  ;;  %v1767_v19 = vsel %vm1739_vm5, %v4103_v61, -inf }
 0x318   : > { %1750 = vmax.xlane.f32.xlu0 %v1749_v2 }
 0x31c   : > { %v4107_v3 = vpop.f32.mrb[12].mxu1  ;;  %v4109_v4 = vpop.f32.mrb[12].mxu0 }
 0x31d   : > { %v3066_v5 = vpop.f32.mrb[13].mxu1  ;;  %v3090_v6 = vpop.f32.mrb[13].mxu0  ;;  %v1752_v7 = vsel %vm1739_vm5, %v4107_v3, -inf  ;;  %v1776_v26 = vsel %vm1739_vm5, %v4109_v4, -inf }
 0x31e   : > { %1753 = vmax.xlane.f32.xlu1 %v1752_v7  ;;  %v4113_v8 = vpop.f32.mrb[14].mxu1  ;;  %v4115_v9 = vpop.f32.mrb[14].mxu0 }
 0x31f   : > { %v3067_v10 = vpop.f32.mrb[15].mxu1  ;;  %v3091_v11 = vpop.f32.mrb[15].mxu0  ;;  %v1755_v12 = vsel %vm1739_vm5, %v4113_v8, -inf  ;;  %v1779_v27 = vsel %vm1739_vm5, %v4115_v9, -inf }
 0x320   : > { %1756 = vmax.xlane.f32.xlu0 %v1755_v12  ;;  %v1895_v10 = vld [vmem:[#allocation3 + $0x18] sm:$0xff] }
 0x324   : > { %v4119_v13 = vpop.f32.mrb[16].mxu1 }
 0x325   : > { %v3072_v14 = vpop.f32.mrb[17].mxu1  ;;  %v1758_v15 = vsel %vm1739_vm5, %v4119_v13, -inf }
 0x326   : > { %1759 = vmax.xlane.f32.xlu1 %v1758_v15  ;;  %v4123_v28 = vpop.f32.mrb[18].mxu1 }
 0x327   : > { %v3073_v16 = vpop.f32.mrb[19].mxu1  ;;  %v1761_v17 = vsel %vm1739_vm5, %v4123_v28, -inf }
 0x328   : > { %1762 = vmax.xlane.f32.xlu0 %v1761_v17 }
 0x32a   : > { %1765 = vmax.xlane.f32.xlu1 %v1764_v18 }
 0x32c   : > { %v4131_v20 = vpop.f32.mrb[20].mxu1  ;;  %1768 = vmax.xlane.f32.xlu0 %v1767_v19 }
 0x32d   : > { %v3084_v21 = vpop.f32.mrb[21].mxu1  ;;  %v1770_v22 = vsel %vm1739_vm5, %v4131_v20, -inf }
 0x32e   : > { %v4135_v23 = vpop.f32.mrb[22].mxu1  ;;  %1771 = vmax.xlane.f32.xlu1 %v1770_v22 }
 0x32f   : > { %v3085_v24 = vpop.f32.mrb[23].mxu1  ;;  %v1773_v25 = vsel %vm1739_vm5, %v4135_v23, -inf }
 0x330   : > { %1774 = vmax.xlane.f32.xlu0 %v1773_v25 }
 0x332   : > { %1777 = vmax.xlane.f32.xlu1 %v1776_v26 }
 0x334   : > { %v4143_v29 = vpop.f32.mrb[24].mxu1  ;;  %1780 = vmax.xlane.f32.xlu0 %v1779_v27 }
 0x335   : > { %v3096_v30 = vpop.f32.mrb[25].mxu1  ;;  %v1782_v31 = vsel %vm1739_vm5, %v4143_v29, -inf }
 0x336   : > { %v4147_v32 = vpop.f32.mrb[26].mxu1  ;;  %1783 = vmax.xlane.f32.xlu1 %v1782_v31 }
 0x337   : > { %v3097_v33 = vpop.f32.mrb[27].mxu1  ;;  %v1785_v34 = vsel %vm1739_vm5, %v4147_v32, -inf }
 0x338   : > { %1786 = vmax.xlane.f32.xlu0 %v1785_v34 }
 0x39b   : > { %v1742_v35 = vpop.xlane.xlu0 %1741 }
 0x39c   : > { %v1788_v36 = vsub.f32 %v4087_v48, %v1742_v35 }
 0x39d   : > { %v1745_v37 = vpop.xlane.xlu1 %1744 }
 0x39e   : > { %v1804_v38 = vmul.f32 1.442695, %v1788_v36  ;;  %v1789_v39 = vsub.f32 %v4091_v52, %v1745_v37 }
 0x3a0   : > { %3301 = vpow2.f32 %v1804_v38  ;;  %v1806_v40 = vmul.f32 1.442695, %v1789_v39 }
 0x3a2   : > { %3303 = vpow2.f32 %v1806_v40 }
 0x3a3   : > { %v1748_v41 = vpop.xlane.xlu1 %1747 }
 0x3a4   : > { %v1790_v42 = vsub.f32 %v4095_v55, %v1748_v41 }
 0x3a5   : > { %v1751_v43 = vpop.xlane.xlu0 %1750 }
 0x3a6   : > { %v1808_v44 = vmul.f32 1.442695, %v1790_v42  ;;  %v1791_v45 = vsub.f32 %v4101_v60, %v1751_v43  ;;  %v1897_v42 = vld [vmem:[#allocation3 + $0x28] sm:$0xff] }
 0x3a8   : > { %v1810_v46 = vmul.f32 1.442695, %v1791_v45  ;;  %3305 = vpow2.f32 %v1808_v44 }
 0x3aa   : > { %v3302_v47 = vpop.eup %3301  ;;  %3307 = vpow2.f32 %v1810_v46  ;;  %v1898_v46 = vld [vmem:[#allocation3 + $0x30] sm:$0xff] }
 0x3ab   : > { %v1754_v49 = vpop.xlane.xlu1 %1753  ;;  %v1836_v48 = vsel %vm1739_vm5, %v3302_v47, 0.0 }
 0x3ac   : > { %v3304_v50 = vpop.eup %3303  ;;  %v1792_v52 = vsub.f32 %v4107_v3, %v1754_v49  ;;  %1837 = vadd.xlane.f32.xlu1 %v1836_v48 }
 0x3ad   : > { %v1757_v53 = vpop.xlane.xlu0 %1756  ;;  %v1839_v54 = vsel %vm1739_vm5, %v3304_v50, 0.0  ;;  %v1884_v57 = vpack.c.bf16 %v3304_v50, %v3302_v47 }
 0x3ae   : > { %v1812_v55 = vmul.f32 1.442695, %v1792_v52  ;;  %v1793_v58 = vsub.f32 %v4113_v8, %v1757_v53  ;;  %1840 = vadd.xlane.f32.xlu0 %v1839_v54  ;;  %v1899_v53 = vld [vmem:[#allocation3 + $0x38] sm:$0xff] }
 0x3af   : > { %3101 = vmatmul.mubr.msk.bf16.vlgmr.msra.gmra.mrb[16].mxu0 %vm1739_vm5, %v1884_v57 }
 0x3b0   : > { %v1814_v60 = vmul.f32 1.442695, %v1793_v58  ;;  %3111 = vmatpush3.bf16.msra.mxu0 %v1894_v59  ;;  %3112 = vmatprep.mubr.msk.bf16.mxu0 %vm3607_vm0, %v3606_v0  ;;  %3309 = vpow2.f32 %v1812_v55 }
 0x3b1   : > { %3122 = vmatprep.subr.bf16.mxu0 %v3606_v0 }
 0x3b2   : > { %3311 = vpow2.f32 %v1814_v60  ;;  %v4163_v63 = vpop.eup %3305 }
 0x3b3   : > { %v1760_v1 = vpop.xlane.xlu1 %1759  ;;  %v1842_v47 = vsel %vm1739_vm5, %v4163_v63, 0.0 }
 0x3b4   : > { %v4165_v2 = vpop.eup %3307  ;;  %v1794_v3 = vsub.f32 %v4119_v13, %v1760_v1 }
 0x3b5   : > { %v1763_v5 = vpop.xlane.xlu0 %1762  ;;  %v1885_v6 = vpack.c.bf16 %v4165_v2, %v4163_v63  ;;  %v1845_v48 = vsel %vm1739_vm5, %v4165_v2, 0.0 }
 0x3b6   : > { %v1816_v7 = vmul.f32 1.442695, %v1794_v3  ;;  %v1795_v8 = vsub.f32 %v4123_v28, %v1763_v5 }
 0x3b7   : > { %3107 = vmatmul.mubr.msk.bf16.vlgmr.msra.gmra.mrb[28].mxu1 %vm1739_vm5, %v1885_v6  ;;  %v1766_v11 = vpop.xlane.xlu1 %1765 }
 0x3b8   : > { %v1818_v12 = vmul.f32 1.442695, %v1795_v8  ;;  %3117 = vmatpush3.bf16.msra.mxu1 %v1895_v10  ;;  %v1796_v14 = vsub.f32 %v4097_v56, %v1766_v11  ;;  %3118 = vmatprep.mubr.msk.bf16.mxu1 %vm3607_vm0, %v3606_v0  ;;  %3313 = vpow2.f32 %v1816_v7  ;;  %v3297_v11 = vld [vmem:[#allocation12] sm:$0xff]  }
 0x3b9   : > { %v1769_v13 = vpop.xlane.xlu0 %1768  ;;  %3128 = vmatprep.subr.bf16.mxu1 %v3606_v0 }
 0x3ba   : > { %3315 = vpow2.f32 %v1818_v12  ;;  %v1820_v15 = vmul.f32 1.442695, %v1796_v14  ;;  %v1797_v16 = vsub.f32 %v4103_v61, %v1769_v13  ;;  %v4177_v28 = vpop.eup %3309  ;;  %v1896_v61 = vld [vmem:[#allocation3 + $0x20] sm:$0xff] }
 0x3bb   : > { %v1772_v17 = vpop.xlane.xlu1 %1771  ;;  %v1848_v60 = vsel %vm1739_vm5, %v4177_v28, 0.0 }
 0x3bc   : > { %v4179_v18 = vpop.eup %3311  ;;  %3317 = vpow2.f32 %v1820_v15  ;;  %v1822_v19 = vmul.f32 1.442695, %v1797_v16  ;;  %v1798_v56 = vsub.f32 %v4131_v20, %v1772_v17 }
 0x3bd   : > { %v1775_v21 = vpop.xlane.xlu0 %1774  ;;  %v1886_v22 = vpack.c.bf16 %v4179_v18, %v4177_v28  ;;  %v1851_v1 = vsel %vm1739_vm5, %v4179_v18, 0.0 }
 0x3be   : > { %3319 = vpow2.f32 %v1822_v19  ;;  %v1824_v24 = vmul.f32 1.442695, %v1798_v56  ;;  %v1799_v25 = vsub.f32 %v4135_v23, %v1775_v21 }
 0x3bf   : > { %3113 = vmatmul.mubr.msk.bf16.vlgmr.msra.gmra.mrb[20].mxu0 %vm1739_vm5, %v1886_v22  ;;  %v1778_v26 = vpop.xlane.xlu1 %1777 }
 0x3c0   : > { %v1826_v27 = vmul.f32 1.442695, %v1799_v25  ;;  %3123 = vmatpush3.bf16.msra.mxu0 %v1896_v61  ;;  %v1800_v30 = vsub.f32 %v4109_v4, %v1778_v26  ;;  %3124 = vmatprep.mubr.msk.bf16.mxu0 %vm3607_vm0, %v3606_v0  ;;  %3321 = vpow2.f32 %v1824_v24 }
 0x3c1   : > { %v1781_v20 = vpop.xlane.xlu0 %1780  ;;  %3134 = vmatprep.subr.bf16.mxu0 %v3606_v0 }
 0x3c2   : > { %3323 = vpow2.f32 %v1826_v27  ;;  %v1828_v31 = vmul.f32 1.442695, %v1800_v30  ;;  %v1801_v33 = vsub.f32 %v4115_v9, %v1781_v20  ;;  %v3314_v23 = vpop.eup %3313 }
 0x3c3   : > { %v1784_v34 = vpop.xlane.xlu1 %1783  ;;  %v1854_v3 = vsel %vm1739_vm5, %v3314_v23, 0.0 }
 0x3c4   : > { %v3316_v35 = vpop.eup %3315  ;;  %3325 = vpow2.f32 %v1828_v31  ;;  %v1830_v36 = vmul.f32 1.442695, %v1801_v33  ;;  %v1802_v37 = vsub.f32 %v4143_v29, %v1784_v34 }
 0x3c5   : > { %v1787_v38 = vpop.xlane.xlu0 %1786  ;;  %v1887_v4 = vpack.c.bf16 %v3316_v35, %v3314_v23  ;;  %v1857_v5 = vsel %vm1739_vm5, %v3316_v35, 0.0 }
 0x3c6   : > { %v3318_v39 = vpop.eup %3317  ;;  %3327 = vpow2.f32 %v1830_v36  ;;  %v1832_v40 = vmul.f32 1.442695, %v1802_v37  ;;  %v1803_v41 = vsub.f32 %v4147_v32, %v1787_v38 }
 0x3c7   : > { %3119 = vmatmul.mubr.msk.bf16.vlgmr.msra.gmra.mrb[32].mxu1 %vm1739_vm5, %v1887_v4  ;;  %v1860_v43 = vsel %vm1739_vm5, %v3318_v39, 0.0 }
 0x3c8   : > { %v3320_v9 = vpop.eup %3319  ;;  %v1834_v44 = vmul.f32 1.442695, %v1803_v41  ;;  %3129 = vmatpush3.bf16.msra.mxu1 %v1897_v42  ;;  %1861 = vadd.xlane.f32.xlu1 %v1860_v43  ;;  %3329 = vpow2.f32 %v1832_v40 }
 0x3c9   : > { %v1863_v45 = vsel %vm1739_vm5, %v3320_v9, 0.0  ;;  %v1888_v29 = vpack.c.bf16 %v3320_v9, %v3318_v39  ;;  %3130 = vmatprep.mubr.msk.bf16.mxu1 %vm3607_vm0, %v3606_v0  ;;  %3140 = vmatprep.subr.bf16.mxu1 %v3606_v0 }
 0x3ca   : > { %3331 = vpow2.f32 %v1834_v44  ;;  %1864 = vadd.xlane.f32.xlu0 %v1863_v45  ;;  %v3322_v32 = vpop.eup %3321 }
 0x3cb   : > { %3125 = vmatmul.mubr.msk.bf16.vlgmr.msra.gmra.mrb[24].mxu0 %vm1739_vm5, %v1888_v29  ;;  %v1866_v6 = vsel %vm1739_vm5, %v3322_v32, 0.0 }
 0x3cc   : > { %v3324_v49 = vpop.eup %3323  ;;  %3135 = vmatpush3.bf16.msra.mxu0 %v1898_v46  ;;  %1843 = vadd.xlane.f32.xlu1 %v1842_v47 }
 0x3cd   : > { %v1889_v50 = vpack.c.bf16 %v3324_v49, %v3322_v32  ;;  %3136 = vmatprep.mubr.msk.bf16.mxu0 %vm3607_vm0, %v3606_v0  ;;  %3146 = vmatprep.subr.bf16.mxu0 %v3606_v0  ;;  %v1869_v7 = vsel %vm1739_vm5, %v3324_v49, 0.0 }
 0x3ce   : > { %v3326_v52 = vpop.eup %3325  ;;  %1846 = vadd.xlane.f32.xlu0 %v1845_v48 }
 0x3cf   : > { %3131 = vmatmul.mubr.msk.bf16.vlgmr.msra.gmra.mrb[36].mxu1 %vm1739_vm5, %v1889_v50  ;;  %v1872_v54 = vsel %vm1739_vm5, %v3326_v52, 0.0 }
 0x3d0   : > { %v3328_v57 = vpop.eup %3327  ;;  %3141 = vmatpush3.bf16.msra.mxu1 %v1899_v53  ;;  %1873 = vadd.xlane.f32.xlu1 %v1872_v54 }
 0x3d1   : > { %v1875_v55 = vsel %vm1739_vm5, %v3328_v57, 0.0  ;;  %v1890_v58 = vpack.c.bf16 %v3328_v57, %v3326_v52  ;;  %3142 = vmatprep.mubr.msk.bf16.mxu1 %vm3607_vm0, %v3606_v0 }
 0x3d2   : > { %1876 = vadd.xlane.f32.xlu0 %v1875_v55  ;;  %v3330_v59 = vpop.eup %3329 }
 0x3d3   : > { %3137 = vmatmul.mubr.msk.bf16.vlgmr.msra.gmra.mrb[28].mxu0 %vm1739_vm5, %v1890_v58  ;;  %v1878_v8 = vsel %vm1739_vm5, %v3330_v59, 0.0 }
 0x3d4   : > { %v3332_v63 = vpop.eup %3331  ;;  %1849 = vadd.xlane.f32.xlu1 %v1848_v60  ;;  %3154 = vmatprep.mubr.msk.bf16.mxu0 %vm3607_vm0, %v3606_v0 }
 0x3d5   : > { %v1891_v2 = vpack.c.bf16 %v3332_v63, %v3330_v59  ;;  %v1881_v10 = vsel %vm1739_vm5, %v3332_v63, 0.0  ;;  %3147 = vmatpush3.bf16.msra.mxu0 %v3297_v11 }
 0x3d6   : > { %1852 = vadd.xlane.f32.xlu0 %v1851_v1  ;;  %3148 = vmatprep.subr.bf16.mxu0 %v3606_v0 }
 0x3d7   : > { %3143 = vmatmul.mubr.msk.bf16.vlgmr.msra.gmra.mrb[40].mxu1 %vm1739_vm5, %v1891_v2 }
 0x3d8   : > { %1855 = vadd.xlane.f32.xlu1 %v1854_v3 }
 0x3da   : > { %1858 = vadd.xlane.f32.xlu0 %v1857_v5 }
 0x3dc   : > { %1867 = vadd.xlane.f32.xlu1 %v1866_v6 }
 0x3de   : > { %1870 = vadd.xlane.f32.xlu0 %v1869_v7 }
 0x3e0   : > { %1879 = vadd.xlane.f32.xlu1 %v1878_v8 }
 0x3e2   : > { %1882 = vadd.xlane.f32.xlu0 %v1881_v10 }
 0x439   : > { %v1838_v12 = vpop.xlane.xlu1 %1837 }
 0x43a   : > { %3333 = vrcp.f32 %v1838_v12 }
 0x43b   : > { %v1841_v14 = vpop.xlane.xlu0 %1840 }
 0x43c   : > { %3335 = vrcp.f32 %v1841_v14 }
 0x444   : > { %v3334_v56 = vpop.eup %3333 }
 0x446   : > { %v3336_v22 = vpop.eup %3335 }
 0x455   : > { %v1862_v13 = vpop.xlane.xlu1 %1861 }
 0x457   : > { %v1865_v15 = vpop.xlane.xlu0 %1864 }
 0x459   : > { %v1844_v16 = vpop.xlane.xlu1 %1843 }
 0x45a   : > { %3337 = vrcp.f32 %v1844_v16 }
 0x45b   : > { %v1847_v28 = vpop.xlane.xlu0 %1846 }
 0x45c   : > { %3339 = vrcp.f32 %v1847_v28 }
 0x45d   : > { %v1874_v17 = vpop.xlane.xlu1 %1873 }
 0x45f   : > { %v1877_v18 = vpop.xlane.xlu0 %1876 }
 0x461   : > { %v1850_v27 = vpop.xlane.xlu1 %1849 }
 0x462   : > { %3341 = vrcp.f32 %v1850_v27 }
 0x463   : > { %v1853_v30 = vpop.xlane.xlu0 %1852 }
 0x464   : > { %3343 = vrcp.f32 %v1853_v30  ;;  %v3338_v33 = vpop.eup %3337 }
 0x465   : > { %v1856_v4 = vpop.xlane.xlu1 %1855 }
 0x466   : > { %v3340_v34 = vpop.eup %3339  ;;  %3345 = vrcp.f32 %v1856_v4 }
 0x467   : > { %v1859_v39 = vpop.xlane.xlu0 %1858 }
 0x468   : > { %3347 = vrcp.f32 %v1859_v39 }
 0x469   : > { %3349 = vrcp.f32 %v1862_v13  ;;  %v1868_v50 = vpop.xlane.xlu1 %1867 }
 0x46a   : > { %3351 = vrcp.f32 %v1865_v15 }
 0x46b   : > { %v1871_v52 = vpop.xlane.xlu0 %1870  ;;  %3353 = vrcp.f32 %v1868_v50 }
 0x46c   : > { %v3342_v44 = vpop.eup %3341  ;;  %3355 = vrcp.f32 %v1871_v52 }
 0x46d   : > { %3357 = vrcp.f32 %v1874_v17  ;;  %v1880_v5 = vpop.xlane.xlu1 %1879 }
 0x46e   : > { %v3344_v32 = vpop.eup %3343  ;;  %3359 = vrcp.f32 %v1877_v18 }
 0x46f   : > { %v1883_v10 = vpop.xlane.xlu0 %1882  ;;  %3361 = vrcp.f32 %v1880_v5 }
 0x470   : > { %v3346_v57 = vpop.eup %3345  ;;  %3363 = vrcp.f32 %v1883_v10 }
 0x472   : > { %v3348_v58 = vpop.eup %3347 }
 0x473   : > { %v3350_v3 = vpop.eup %3349 }
 0x474   : > { %v3352_v8 = vpop.eup %3351 }
 0x482   : > { %v1937_v19 = vpop.f32.mrb[16].mxu0 }
 0x483   : > { %v3102_v21 = vpop.f32.mrb[17].mxu0  ;;  %v2268_v25 = vmul.f32 %v3334_v56, %v1937_v19  ;;  %v3354_v19 = vpop.eup %3353 }
 0x484   : > { %v1940_v24 = vpop.f32.mrb[18].mxu0 }
 0x485   : > { %v2269_v61 = vmul.f32 %v3336_v22, %v1940_v24  ;;  %v3103_v26 = vpop.f32.mrb[19].mxu0  ;;  %v3356_v22 = vpop.eup %3355 }
 0x486   : > { %v3358_v30 = vpop.eup %3357 }
 0x487   : > { %v2284_v20 = vpack.c.bf16 %v2269_v61, %v2268_v25 }
 0x489   : > { %v2296_v41 = vshrl.u32 %v2284_v20, 16 }
 0x48a   : > { %v1981_v31 = vpop.f32.mrb[28].mxu1 }
 0x48b   : > { %v3108_v23 = vpop.f32.mrb[29].mxu1  ;;  %v2270_v36 = vmul.f32 %v3338_v33, %v1981_v31  ;;  %v3360_v33 = vpop.eup %3359 }
 0x48c   : > { %v1984_v35 = vpop.f32.mrb[30].mxu1 }
 0x48d   : > { %v2271_v37 = vmul.f32 %v3340_v34, %v1984_v35  ;;  %v3109_v38 = vpop.f32.mrb[31].mxu1 }
 0x48f   : > { %v2285_v40 = vpack.c.bf16 %v2271_v37, %v2270_v36 }
 0x491   : > { %v4227_v42 = vpack.i.b16 %v2285_v40, %v2284_v20  ;;  %v2297_v43 = vshrl.u32 %v2285_v40, 16 }
 0x492   : > { %v2025_v9 = vpop.f32.mrb[20].mxu0 }
 0x493   : > { %v4229_v45 = vpack.i.b16 %v2297_v43, %v2296_v41  ;;  %v3114_v29 = vpop.f32.mrb[21].mxu0  ;;  %v2272_v47 = vmul.f32 %v3342_v44, %v2025_v9 }
 0x494   : > { %v2028_v46 = vpop.f32.mrb[22].mxu0  ;;  %v3362_v29 = vpop.eup %3361 }
 0x495   : > { %v2273_v49 = vmul.f32 %v3344_v32, %v2028_v46  ;;  %v3115_v48 = vpop.f32.mrb[23].mxu0  ;;  %v3364_v46 = vpop.eup %3363 }
 0x497   : > { %v2286_v53 = vpack.c.bf16 %v2273_v49, %v2272_v47 }
 0x499   : > { %v2304_v11 = vshrl.u32 %v2286_v53, 16 }
 0x49a   : > { %v2069_v54 = vpop.f32.mrb[32].mxu1 }
 0x49b   : > { %v3120_v55 = vpop.f32.mrb[33].mxu1  ;;  %v2274_v60 = vmul.f32 %v3346_v57, %v2069_v54 }
 0x49c   : > { %v2072_v59 = vpop.f32.mrb[34].mxu1 }
 0x49d   : > { %v2275_v63 = vmul.f32 %v3348_v58, %v2072_v59  ;;  %v3121_v1 = vpop.f32.mrb[35].mxu1 }
 0x49e   : > { %v2113_v2 = vpop.f32.mrb[24].mxu0 }
 0x49f   : > { %v2287_v6 = vpack.c.bf16 %v2275_v63, %v2274_v60  ;;  %v3126_v7 = vpop.f32.mrb[25].mxu0  ;;  %v2276_v15 = vmul.f32 %v3350_v3, %v2113_v2 }
 0x4a0   : > { %v2116_v12 = vpop.f32.mrb[26].mxu0 }
 0x4a1   : > { %v2302_v14 = vpack.i.b16 %v2287_v6, %v2286_v53  ;;  %v2305_v13 = vshrl.u32 %v2287_v6, 16  ;;  %v2277_v16 = vmul.f32 %v3352_v8, %v2116_v12  ;;  %v3127_v28 = vpop.f32.mrb[27].mxu0 }
 0x4a2   : > { %v2157_v17 = vpop.f32.mrb[36].mxu1 }
 0x4a3   : > { %v2306_v56 = vpack.i.b16 %v2305_v13, %v2304_v11  ;;  %v2288_v18 = vpack.c.bf16 %v2277_v16, %v2276_v15  ;;  %v3132_v21 = vpop.f32.mrb[37].mxu1  ;;  %v2278_v25 = vmul.f32 %v3354_v19, %v2157_v17 }
 0x4a4   : > { %v2160_v24 = vpop.f32.mrb[38].mxu1 }
 0x4a5   : > { %v2279_v61 = vmul.f32 %v3356_v22, %v2160_v24  ;;  %v3133_v26 = vpop.f32.mrb[39].mxu1  ;;  %v2312_v23 = vshrl.u32 %v2288_v18, 16 }
 0x4a6   : > { %v2201_v27 = vpop.f32.mrb[28].mxu0 }
 0x4a7   : > { %v2289_v20 = vpack.c.bf16 %v2279_v61, %v2278_v25  ;;  %v3138_v31 = vpop.f32.mrb[29].mxu0  ;;  %v2280_v37 = vmul.f32 %v3358_v30, %v2201_v27 }
 0x4a8   : > { %v2204_v34 = vpop.f32.mrb[30].mxu0 }
 0x4a9   : > { %v2310_v35 = vpack.i.b16 %v2289_v20, %v2288_v18  ;;  %v2313_v36 = vshrl.u32 %v2289_v20, 16  ;;  %v2281_v38 = vmul.f32 %v3360_v33, %v2204_v34  ;;  %v3139_v4 = vpop.f32.mrb[31].mxu0  ;;  %v3298_v20 = vld [vmem:[#allocation12 + $0x8] sm:$0xff]  }
 0x4aa   : > { %v2245_v39 = vpop.f32.mrb[40].mxu1  ;;  %3149 = vmatpush3.bf16.msra.mxu0 %v3298_v20 }
 0x4ab   : > { %v2314_v40 = vpack.i.b16 %v2313_v36, %v2312_v23  ;;  %v2324_v41 = vcombine.low %v4227_v42, %v2310_v35  ;;  %v2325_v43 = vcombine.high %v4227_v42, %v2310_v35  ;;  %v2290_v9 = vpack.c.bf16 %v2281_v38, %v2280_v37  ;;  %v3144_v44 = vpop.f32.mrb[41].mxu1  ;;  %3150 = vmatprep.subr.bf16.mxu0 %v3606_v0 }
 0x4ac   : > { %v2248_v32 = vpop.f32.mrb[42].mxu1  ;;  %v2282_v50 = vmul.f32 %v3362_v29, %v2245_v39 }
 0x4ad   : > { %v2392_v47 = vcombine.low %v4229_v45, %v2314_v40  ;;  %v2393_v49 = vcombine.high %v4229_v45, %v2314_v40  ;;  %v3145_v48 = vpop.f32.mrb[43].mxu1  ;;  %v2283_v52 = vmul.f32 %v3364_v46, %v2248_v32  ;;  %v2320_v54 = vshrl.u32 %v2290_v9, 16 }
 0x4ae   : > { %v2332_v42 = vrot.slane %v2324_v41, %v3959_v51  ;;  %v2339_v63 = vrot.slane %v2325_v43, %v3959_v51  ;;  %v3299_v48 = vld [vmem:[#allocation12 + $0x10] sm:$0xff]  }
 0x4af   : > { %v2291_v53 = vpack.c.bf16 %v2283_v52, %v2282_v50  ;;  %v2400_v10 = vrot.slane %v2392_v47, %v3959_v51  ;;  %v2407_v11 = vrot.slane %v2393_v49, %v3959_v51  ;;  %3151 = vmatpush3.bf16.msra.mxu0 %v3299_v48 }
 0x4b0   : > { %3152 = vmatprep.subr.bf16.mxu0 %v3606_v0 }
 0x4b1   : > { %v2318_v57 = vpack.i.b16 %v2291_v53, %v2290_v9  ;;  %v2321_v55 = vshrl.u32 %v2291_v53, 16 }
 0x4b3   : > { %v2322_v58 = vpack.i.b16 %v2321_v55, %v2320_v54  ;;  %v2340_v59 = vcombine.low %v2302_v14, %v2318_v57  ;;  %v2341_v60 = vcombine.high %v2302_v14, %v2318_v57 }
 0x4b5   : > { %v2348_v1 = vrot.slane %v2340_v59, %v3959_v51  ;;  %v2355_v2 = vrot.slane %v2341_v60, %v3959_v51  ;;  %v2408_v3 = vcombine.low %v2306_v56, %v2322_v58  ;;  %v2409_v45 = vcombine.high %v2306_v56, %v2322_v58 }
 0x4b7   : > { %v2356_v5 = vcombine.low %v2332_v42, %v2348_v1  ;;  %v2357_v6 = vcombine.high %v2332_v42, %v2348_v1  ;;  %v2372_v7 = vcombine.low %v2339_v63, %v2355_v2  ;;  %v2373_v8 = vcombine.high %v2339_v63, %v2355_v2 }
 0x4b8   : > { %v2416_v12 = vrot.slane %v2408_v3, %v3959_v51  ;;  %v2423_v14 = vrot.slane %v2409_v45, %v3959_v51 }
 0x4b9   : > { %v2364_v13 = vrot.slane %v2356_v5, %v3961_v62  ;;  %v2371_v15 = vrot.slane %v2357_v6, %v3961_v62  ;;  %v2380_v16 = vrot.slane %v2372_v7, %v3961_v62  ;;  %v2387_v28 = vrot.slane %v2373_v8, %v3961_v62  ;;  %v3300_v5 = vld [vmem:[#allocation12 + $0x18] sm:$0xff]  }
 0x4ba   : > { %v2424_v17 = vcombine.low %v2400_v10, %v2416_v12  ;;  %v2425_v19 = vcombine.high %v2400_v10, %v2416_v12  ;;  %v2440_v56 = vcombine.low %v2407_v11, %v2423_v14  ;;  %v2441_v18 = vcombine.high %v2407_v11, %v2423_v14  ;;  %3153 = vmatpush3.bf16.msra.mxu0 %v3300_v5 }
 0x4bb   : > { %v2460_v21 = vcombine.low %v2364_v13, %v2371_v15  ;;  %v2945_v22 = vcombine.high %v2364_v13, %v2371_v15  ;;  %v2476_v24 = vcombine.low %v2380_v16, %v2387_v28  ;;  %v2946_v25 = vcombine.high %v2380_v16, %v2387_v28 }
 0x4bc   : > { %v2432_v61 = vrot.slane %v2424_v17, %v3961_v62  ;;  %v2439_v26 = vrot.slane %v2425_v19, %v3961_v62  ;;  %v2448_v27 = vrot.slane %v2440_v56, %v3961_v62  ;;  %v2455_v30 = vrot.slane %v2441_v18, %v3961_v62 }
 0x4bd   : > { %v2467_v31 = vrot.slane %v2460_v21, %v3959_v51  ;;  %v2475_v33 = vrot.slane %v2945_v22, %v3959_v51  ;;  %v2483_v23 = vrot.slane %v2476_v24, %v3959_v51  ;;  %v2491_v34 = vrot.slane %v2946_v25, %v3959_v51 }
 0x4be   : > { %v2528_v35 = vcombine.low %v2432_v61, %v2439_v26  ;;  %v2947_v36 = vcombine.high %v2432_v61, %v2439_v26  ;;  %v2544_v37 = vcombine.low %v2448_v27, %v2455_v30  ;;  %v2948_v38 = vcombine.high %v2448_v27, %v2455_v30 }
 0x4bf   : > { %v2493_v4 = vcombine.high %v2467_v31, %v2475_v33  ;;  %v2509_v39 = vcombine.high %v2483_v23, %v2491_v34  ;;  %v2492_v40 = vcombine.low %v2467_v31, %v2475_v33  ;;  %v2508_v41 = vcombine.low %v2483_v23, %v2491_v34 }
 0x4c0   : > { %v2535_v43 = vrot.slane %v2528_v35, %v3959_v51  ;;  %v2543_v9 = vrot.slane %v2947_v36, %v3959_v51  ;;  %v2551_v44 = vrot.slane %v2544_v37, %v3959_v51  ;;  %v2559_v29 = vrot.slane %v2948_v38, %v3959_v51  ;;  %v2949_v35 = vld [vmem:[%s4340_s5] ss:$0 sm:$0xff] }
 0x4c1   : > { %v2507_v32 = vrot.slane %v2493_v4, %v3961_v62  ;;  %v2523_v46 = vrot.slane %v2509_v39, %v3961_v62  ;;  %v2500_v47 = vrot.slane %v2492_v40, %v3961_v62  ;;  %v2516_v49 = vrot.slane %v2508_v41, %v3961_v62 }
 0x4c2   : > { %v2561_v50 = vcombine.high %v2535_v43, %v2543_v9  ;;  %v2577_v52 = vcombine.high %v2551_v44, %v2559_v29  ;;  %v2560_v53 = vcombine.low %v2535_v43, %v2543_v9  ;;  %v2576_v54 = vcombine.low %v2551_v44, %v2559_v29 }
 0x4c3   : > { %v2526_v57 = vcombine.low %v2507_v32, %v2523_v46  ;;  %v2525_v55 = vcombine.high %v2500_v47, %v2516_v49  ;;  %v2524_v58 = vcombine.low %v2500_v47, %v2516_v49  ;;  %v2527_v59 = vcombine.high %v2507_v32, %v2523_v46 }
 0x4c4   : > { %v2575_v51 = vrot.slane %v2561_v50, %v3961_v62  ;;  %v2591_v60 = vrot.slane %v2577_v52, %v3961_v62  ;;  %v2568_v42 = vrot.slane %v2560_v53, %v3961_v62  ;;  %v2584_v63 = vrot.slane %v2576_v54, %v3961_v62 }
 0x4c5   : > { %v2611_v6 = vshrl.u32 %v2526_v57, 16  ;;  %v2599_v7 = vshrl.u32 %v2524_v58, 16  ;;  %v2617_v8 = vshrl.u32 %v2527_v59, 16  ;;  %v2605_v10 = vshrl.u32 %v2525_v55, 16 }
 0x4c6   : > { %v2594_v1 = vcombine.low %v2575_v51, %v2591_v60  ;;  %v2593_v2 = vcombine.high %v2568_v42, %v2584_v63  ;;  %v2592_v3 = vcombine.low %v2568_v42, %v2584_v63  ;;  %v2595_v45 = vcombine.high %v2575_v51, %v2591_v60 }
 0x4c8   : > { %v2610_v11 = vpack.i.b16 %v2594_v1, %v2526_v57  ;;  %v2604_v12 = vpack.i.b16 %v2593_v2, %v2525_v55  ;;  %v2612_v14 = vshrl.u32 %v2594_v1, 16  ;;  %v2600_v13 = vshrl.u32 %v2592_v3, 16 }
 0x4c9   : > { %v2618_v15 = vshrl.u32 %v2595_v45, 16  ;;  %v2606_v16 = vshrl.u32 %v2593_v2, 16  ;;  %v2616_v28 = vpack.i.b16 %v2595_v45, %v2527_v59  ;;  %v2598_v62 = vpack.i.b16 %v2592_v3, %v2524_v58 }
 0x4ca   : > { %2626 = vrot.lane.b32.xlu1 %v2610_v11, %s3617_s14  ;;  %2622 = vrot.lane.b32.xlu0 %v2604_v12, %s3618_s6  ;;  %v2613_v0 = vpack.i.b16 %v2612_v14, %v2611_v6  ;;  %v2601_v17 = vpack.i.b16 %v2600_v13, %v2599_v7  ;;  %s4284_s14 = scalar_lea.hbm %s4365_s16, %s2961_s17  ;;  %s3507_s6 = scalar_lea.vmem %s4278_s9, 256 }
 0x4cb   : > { %v2619_v19 = vpack.i.b16 %v2618_v15, %v2617_v8  ;;  %v2607_v56 = vpack.i.b16 %v2606_v16, %v2605_v10  ;;  %p3508_p8 = scmp.ne.s32.totalorder %s4278_s9, %s3507_s6 }
 0x4cd   : > { %p3509_p6 = pnand %p3508_p8, %p3845_p5 }
 0x4ce   : > { %2628 = vrot.lane.b32.xlu0 %v2613_v0, %s3619_s20  ;;  %2620 = vrot.lane.b32.xlu1 %v2601_v17, %s3620_s30  ;;  %s3624_s20 = smov [#allocation13]  }
 0x4cf   : > { %p3510_p10 = pneg %p3509_p6 }
 0x4d2   : > { %2632 = vrot.lane.b32.xlu0 %v2619_v19, %s3621_s19  ;;  %2624 = vrot.lane.b32.xlu1 %v2607_v56, %s3622_s8  ;;  %s3511_s19 = sshll.u32 %s3624_s20, 4  ;;  %s3512_s19 = int_to_ptr.vmem [resolvable:$false] %s3511_s19 }
 0x4d3   : > { %s3513_s8 = scalar_lea.vmem %s3512_s19, 512  ;;  %p3514_p3 = scmp.lt.s32.totalorder %s4278_s9, %s3512_s19 }
 0x4d4   : > { %p3515_p7 = scmp.lt.s32.totalorder %s3513_s8, %s3507_s6 }
 0x4d6   : > { %2630 = vrot.lane.b32.xlu1 %v2616_v28, %s3623_s27  ;;  %p3516_p9 = por %p3515_p7, %p3514_p3 }
 0x4d8   : > { %p3517_p0 = pnand %p3516_p9, %p3510_p10 }
 0x53c   : > { %v2627_v18 = vpop.permute.xlu1 %2626  ;;  %v2623_v21 = vpop.permute.xlu0 %2622 }
 0x540   : > { %v2621_v22 = vpop.permute.xlu1 %2620  ;;  %v2629_v25 = vpop.permute.xlu0 %2628 }
 0x541   : > { %v2636_v24 = vsel %vm911_vm4, %v2598_v62, %v2621_v22 }
 0x542   : > { %v2638_v26 = vsel %vm1739_vm5, %v2636_v24, %v2623_v21 }
 0x544   : > { %v2625_v61 = vpop.permute.xlu1 %2624  ;;  %v2633_v33 = vpop.permute.xlu0 %2632 }
 0x545   : > { %v2641_v27 = vsel %vm2639_vm6, %v2638_v26, %v2625_v61 }
 0x546   : > { %v2644_v30 = vsel %vm2642_vm7, %v2641_v27, %v2627_v18 }
 0x547   : > { %v2647_v20 = vsel %vm2645_vm8, %v2644_v30, %v2629_v25 }
 0x548   : > { %v2631_v31 = vpop.permute.xlu1 %2630 }
 0x549   : > { %v2650_v23 = vsel %vm2648_vm9, %v2647_v20, %v2631_v31 }
 0x54a   : > { %v2653_v34 = vsel %vm2651_vm10, %v2650_v23, %v2633_v33 }
 0x54b   : > { %3155 = vmatmul.mubr.msk.bf16.vlgmr.msra.gmra.mrb[32].mxu0 %vm387_vm1, %v2653_v34 }
 0x61e   : > { %v2729_v36 = vpop.f32.mrb[32].mxu0 }
 0x61f   : > { %v2730_v37 = vadd.f32 %v2949_v35, %v2729_v36  ;;  %v3156_v38 = vpop.f32.mrb[33].mxu0 }
 0x620   : > { %v2732_v4 = vpop.f32.mrb[34].mxu0 }
 0x621   : > { %2736 = vst.msk [vmem:[%s341_s7] sm:$0xff] %vm387_vm1, %v2730_v37  ;;  %v2733_v39 = vadd.f32 %v2949_v35, %v2732_v4  ;;  %v3157_v40 = vpop.f32.mrb[35].mxu0 }
 0x623   : > { %2737 = vst.msk [vmem:[%s341_s7 + $0x8] sm:$0xff] %vm387_vm1, %v2733_v39 }
 0x624   : > { %3520 = shalt.err (!%p3517_p0)
}
 0x625   : > { %s3521_s27 = scalar_lea.hbm %s4284_s14, 256  ;;  %s3525_s29 = scalar_lea.hbm %s4365_s16, 512 }
 0x626   : > { %p3522_p4 = scmp.ne.s32.totalorder %s4284_s14, %s3521_s27  ;;  %p3526_p12 = scmp.lt.u32.totalorder %s4284_s14, %s4365_s16 }
 0x627   : > { %p3527_p1 = scmp.lt.u32.totalorder %s3525_s29, %s3521_s27  ;;  %p3529_p8 = scmp.lt.u32.totalorder %s3521_s27, %s4284_s14 }
 0x628   : > { %p3523_p13 = pnand %p3522_p4, %p3845_p5 }
 0x629   : > { %p3528_p11 = por %p3527_p1, %p3526_p12 }
 0x62a   : > { %p3524_p2 = pneg %p3523_p13 }
 0x62b   : > { %p3530_p6 = por %p3529_p8, %p3528_p11 }
 0x62d   : > { %p3531_p10 = pnand %p3530_p6, %p3524_p2 }
 0x62f   : > { %3534 = shalt.err (!%p3531_p10)
}
 0x630   : > { %s3625_s18 = smov 128  }
 0x631   : > { %3176 = dma.vmem_to_hbm [thread:$0]  (%p3845_p5), %s4278_s9, 256, %s4284_s14, %s2739_s24, %s3625_s18, %s3625_s18, %s3620_s30  }
 0x632 PF: > { %s4366_s11 = sld [smem:[#allocation18_spill]]  ;;  %s4367_s6 = sld [smem:[#allocation19_spill]] }
 0x633   : > { %p4369_p7 = scmp.ge.s32.totalorder %s3597_s26, 2 }
 0x638   : > { %s2769_s20 = sand.u32 1, %s4366_s11   ;;  %p4368_p3 = scmp.ne.s32.totalorder %s4367_s6, 0 }
 0x639   : > { %s2770_s19 = scalar_lea.sflag [#allocation6], %s2769_s20 }
 0x63a   : > { %p3196_p9 = pnand %p4369_p7, %p4368_p3 }
 0x63c   : > { %3572 = dma.done.wait (!%p3196_p9), %s2770_s19, 256  }
 0x63d   : > { %3574 = vsyncadd (!%p3196_p9), %s2770_s19, 4294967040  ;;  %s24_s26 = sadd.s32 1, %s3597_s26   ;;  %s4370_s21 = smov %s3581_s22 }
 0x63e   : > { %p21_p0 = scmp.ge.s32.totalorder %s24_s26, 4   ;;  %s4371_s22 = smov %s3585_s23 }
 0x63f   : > { %s4372_s23 = smov %s3854_s10  ;;  %s4373_s24 = smov %s3593_s25 }
 0x640   : > { %s4374_s25 = smov %s4376_s28  ;;  %23 = sbr.rel (!%p21_p0) target bundleno = 10 (0xa), region = 110 }
 0x647   :  { %2775 = vsyncpa [#allocation5], 1 }
 0x648   :  { %2777 = vsyncpa [#allocation5 + $0x1], 1 }
 0x649   :  { %2778 = vsyncpa [#allocation8], 1 }
 0x64a   :  { %2779 = vsyncpa [#allocation11], 1 }
 0x64b   :  { %2780 = vsyncpa [#allocation6], 1 }
 0x64c   :  { %2782 = vsyncpa [#allocation6 + $0x1], 1 }

</bundles_post_ra>
